<compile_context>
chip_gen: v7x
topology: tpu7x:2x2x1
jax: 0.10.0
libtpu: 0.0.40
codegen_flags: <defaults>
</compile_context>

<pallas_src>
import functools

import jax
import jax.numpy as jnp
from jax.experimental import pallas as pl
from jax.experimental.pallas import tpu as pltpu


def _round_up(x: int, m: int) -> int:
    return ((x + m - 1) // m) * m


def _mlp_kernel(x_ref, w1_ref, b1_ref, w2_ref, b2_ref, w3_ref, b3_ref, o_ref,
                *, use_tanh: bool):
    # Layer 1: (bm, S) @ (S, 1024) + (1, 1024) -> ReLU   (bf16 inputs, f32 acc)
    h1 = jnp.dot(x_ref[...].astype(jnp.bfloat16), w1_ref[...],
                 preferred_element_type=jnp.float32)
    h1 = jnp.maximum(h1 + b1_ref[...], 0.0)
    # Layer 2: (bm, 1024) @ (1024, 512) + (1, 512) -> ReLU
    h2 = jnp.dot(h1.astype(jnp.bfloat16), w2_ref[...],
                 preferred_element_type=jnp.float32)
    h2 = jnp.maximum(h2 + b2_ref[...], 0.0)
    # Layer 3: (bm, 512) @ (512, A_pad) + (1, A_pad) [-> Tanh]
    out = jnp.dot(h2.astype(jnp.bfloat16), w3_ref[...],
                  preferred_element_type=jnp.float32)
    out = out + b3_ref[...]
    if use_tanh:
        out = jnp.tanh(out)
    o_ref[...] = out.astype(o_ref.dtype)


def init_params(key, state_dim, action_dim, std=0.01):
    """PyTorch-convention params matching init=True (normal, mean 0, std 0.01)."""
    ks = jax.random.split(key, 6)
    return {
        "w1": std * jax.random.normal(ks[0], (1024, state_dim), jnp.float32),
        "b1": std * jax.random.normal(ks[1], (1024,), jnp.float32),
        "w2": std * jax.random.normal(ks[2], (512, 1024), jnp.float32),
        "b2": std * jax.random.normal(ks[3], (512,), jnp.float32),
        "w3": std * jax.random.normal(ks[4], (action_dim, 512), jnp.float32),
        "b3": std * jax.random.normal(ks[5], (action_dim,), jnp.float32),
    }


def prepare_params(params, *, weight_dtype=jnp.bfloat16):
    """One-time preprocessing (do NOT call per forward):
    transpose weights to (in, out), cast to bf16, pad layer 3 to 128 lanes."""
    action_dim, hidden2 = params["w3"].shape
    a_pad = _round_up(action_dim, 128)

    w1 = params["w1"].T.astype(weight_dtype)                      # (S, 1024)
    w2 = params["w2"].T.astype(weight_dtype)                      # (1024, 512)
    w3 = jnp.zeros((hidden2, a_pad), weight_dtype)
    w3 = w3.at[:, :action_dim].set(params["w3"].T.astype(weight_dtype))
    b1 = params["b1"].reshape(1, -1).astype(jnp.float32)
    b2 = params["b2"].reshape(1, -1).astype(jnp.float32)
    b3 = jnp.zeros((1, a_pad), jnp.float32)
    b3 = b3.at[:, :action_dim].set(params["b3"].astype(jnp.float32))

    prepared = {"w1": w1, "b1": b1, "w2": w2, "b2": b2, "w3": w3, "b3": b3,
                "action_dim": action_dim}
    return jax.tree_util.tree_map(
        lambda x: jax.device_put(x) if isinstance(x, jnp.ndarray) else x, prepared)


def policy_network_forward(state, prepared, *, use_tanh=False, batch_block=512):
    """state: (B, state_dim) f32 ; prepared: output of prepare_params.
    Returns (B, action_dim) f32."""
    B, state_dim = state.shape
    action_dim = prepared["action_dim"]
    hidden1 = prepared["w1"].shape[1]
    hidden2 = prepared["w2"].shape[1]
    a_pad = prepared["w3"].shape[1]

    # Batch tile: multiple of 8 sublanes, capped so VMEM fits even on v7x (64 MiB)
    # and v5e's 16 MiB default scoped limit (activations at bm=512 are ~3 MiB).
    bm = min(batch_block, _round_up(B, 8))
    B_pad = _round_up(B, bm)
    if B_pad != B:
        state = jnp.pad(state, ((0, B_pad - B), (0, 0)))

    grid = (B_pad // bm,)
    const = lambda i: (0, 0)
    in_specs = [
        pl.BlockSpec((bm, state_dim), lambda i: (i, 0)),      # x: tiled over batch
        pl.BlockSpec(prepared["w1"].shape, const),            # weights stay resident
        pl.BlockSpec(prepared["b1"].shape, const),
        pl.BlockSpec(prepared["w2"].shape, const),
        pl.BlockSpec(prepared["b2"].shape, const),
        pl.BlockSpec(prepared["w3"].shape, const),
        pl.BlockSpec(prepared["b3"].shape, const),
    ]
    out_specs = pl.BlockSpec((bm, a_pad), lambda i: (i, 0))

    weight_bytes = sum(int(prepared[k].size) * prepared[k].dtype.itemsize
                       for k in ("w1", "w2", "w3", "b1", "b2", "b3"))
    cost = pl.CostEstimate(
        flops=2 * B_pad * (state_dim * hidden1 + hidden1 * hidden2 + hidden2 * a_pad),
        transcendentals=(B_pad * a_pad) if use_tanh else 0,
        bytes_accessed=int(state.size) * 4 + weight_bytes + B_pad * a_pad * 4,
    )

    kernel = functools.partial(_mlp_kernel, use_tanh=use_tanh)
    out = pl.pallas_call(
        kernel,
        grid=grid,
        in_specs=in_specs,
        out_specs=out_specs,
        out_shape=jax.ShapeDtypeStruct((B_pad, a_pad), jnp.float32),
        compiler_params=pltpu.CompilerParams(dimension_semantics=("parallel",)),
        cost_estimate=cost,
    )(state, prepared["w1"], prepared["b1"], prepared["w2"], prepared["b2"],
      prepared["w3"], prepared["b3"])
    return out[:B, :action_dim]


if __name__ == "__main__":
    key = jax.random.PRNGKey(0)
    state_dim, action_dim, batch = 32, 8, 8

    pkey, xkey = jax.random.split(key)
    params = init_params(pkey, state_dim, action_dim)
    prepared = prepare_params(params)   # one-time: transpose + bf16 + lane pad
    state = jax.random.normal(xkey, (batch, state_dim), jnp.float32)

    out = policy_network_forward(state, prepared, use_tanh=False)
    jax.block_until_ready(out)

    # Pure-JAX f32 reference (same math as the PyTorch Sequential).
    h1 = jnp.maximum(state @ params["w1"].T + params["b1"], 0.0)
    h2 = jnp.maximum(h1 @ params["w2"].T + params["b2"], 0.0)
    ref = h2 @ params["w3"].T + params["b3"]
    assert out.shape == (batch, action_dim)
    # Tolerance relaxed for bf16 weights (f32 accumulation on MXU).
    assert jnp.allclose(out, ref, atol=5e-3, rtol=5e-2), (
        f"max abs err {jnp.max(jnp.abs(out - ref))}")

    # Tanh variant.
    out_tanh = policy_network_forward(state, prepared, use_tanh=True)
    jax.block_until_ready(out_tanh)
    assert jnp.allclose(out_tanh, jnp.tanh(ref), atol=5e-3, rtol=5e-2)

    # Also exercise a batch that actually tiles (2 grid steps, padded batch).
    big_state = jax.random.normal(xkey, (1000, state_dim), jnp.float32)
    big_out = policy_network_forward(big_state, prepared, use_tanh=False)
    jax.block_until_ready(big_out)
    assert big_out.shape == (1000, action_dim)

    print("KERNEL_OK")
</pallas_src>

<mosaic_0001>
module attributes {stable_mosaic.version = 11 : i64} {
  func.func @_mlp_kernel(%arg0: i32, %arg1: memref<8x32xf32, #tpu.memory_space<vmem>>, %arg2: memref<32x1024xbf16, #tpu.memory_space<vmem>>, %arg3: memref<1x1024xf32, #tpu.memory_space<vmem>>, %arg4: memref<1024x512xbf16, #tpu.memory_space<vmem>>, %arg5: memref<1x512xf32, #tpu.memory_space<vmem>>, %arg6: memref<512x128xbf16, #tpu.memory_space<vmem>>, %arg7: memref<1x128xf32, #tpu.memory_space<vmem>>, %arg8: memref<8x128xf32, #tpu.memory_space<vmem>>) attributes {dimension_semantics = [#tpu.dimension_semantics<parallel>], iteration_bounds = array<i64: 1>, scalar_prefetch = 0 : i64, scratch_operands = 0 : i64, tpu.core_type = #tpu.core_type<tc>, window_params = [{transform_indices = @transform_0, window_bounds = array<i64: 8, 32>}, {pipeline_mode = #tpu.pipeline_mode<synchronous>, transform_indices = @transform_1, window_bounds = array<i64: 32, 1024>}, {pipeline_mode = #tpu.pipeline_mode<synchronous>, transform_indices = @transform_2, window_bounds = array<i64: 1, 1024>}, {pipeline_mode = #tpu.pipeline_mode<synchronous>, transform_indices = @transform_3, window_bounds = array<i64: 1024, 512>}, {pipeline_mode = #tpu.pipeline_mode<synchronous>, transform_indices = @transform_4, window_bounds = array<i64: 1, 512>}, {pipeline_mode = #tpu.pipeline_mode<synchronous>, transform_indices = @transform_5, window_bounds = array<i64: 512, 128>}, {pipeline_mode = #tpu.pipeline_mode<synchronous>, transform_indices = @transform_6, window_bounds = array<i64: 1, 128>}, {transform_indices = @transform_7, window_bounds = array<i64: 8, 128>}]} {
    %c0 = arith.constant 0 : index
    %c0_0 = arith.constant 0 : index
    %0 = vector.load %arg1[%c0, %c0_0] : memref<8x32xf32, #tpu.memory_space<vmem>>, vector<8x32xf32>
    %1 = arith.truncf %0 : vector<8x32xf32> to vector<8x32xbf16>
    %c0_1 = arith.constant 0 : index
    %c0_2 = arith.constant 0 : index
    %2 = vector.load %arg2[%c0_1, %c0_2] : memref<32x1024xbf16, #tpu.memory_space<vmem>>, vector<32x1024xbf16>
    %cst = arith.constant dense<0.000000e+00> : vector<8x1024xf32>
    %3 = tpu.matmul %1, %2, %cst {dimension_numbers = #tpu.dot_dimension_numbers<[1], [0], [0], [1], [0, 0, 1, 1], [], []>} : vector<8x32xbf16>, vector<32x1024xbf16>, vector<8x1024xf32> -> vector<8x1024xf32>
    %c0_3 = arith.constant 0 : index
    %c0_4 = arith.constant 0 : index
    %4 = vector.load %arg3[%c0_3, %c0_4] : memref<1x1024xf32, #tpu.memory_space<vmem>>, vector<1x1024xf32>
    %5 = vector.broadcast %4 : vector<1x1024xf32> to vector<8x1024xf32>
    %6 = arith.addf %3, %5 : vector<8x1024xf32>
    %cst_5 = arith.constant 0.000000e+00 : f32
    %7 = vector.broadcast %cst_5 : f32 to vector<8x1024xf32>
    %8 = arith.maximumf %6, %7 : vector<8x1024xf32>
    %9 = arith.truncf %8 : vector<8x1024xf32> to vector<8x1024xbf16>
    %c0_6 = arith.constant 0 : index
    %c0_7 = arith.constant 0 : index
    %10 = vector.load %arg4[%c0_6, %c0_7] : memref<1024x512xbf16, #tpu.memory_space<vmem>>, vector<1024x512xbf16>
    %cst_8 = arith.constant dense<0.000000e+00> : vector<8x512xf32>
    %11 = tpu.matmul %9, %10, %cst_8 {dimension_numbers = #tpu.dot_dimension_numbers<[1], [0], [0], [1], [0, 0, 1, 1], [], []>} : vector<8x1024xbf16>, vector<1024x512xbf16>, vector<8x512xf32> -> vector<8x512xf32>
    %c0_9 = arith.constant 0 : index
    %c0_10 = arith.constant 0 : index
    %12 = vector.load %arg5[%c0_9, %c0_10] : memref<1x512xf32, #tpu.memory_space<vmem>>, vector<1x512xf32>
    %13 = vector.broadcast %12 : vector<1x512xf32> to vector<8x512xf32>
    %14 = arith.addf %11, %13 : vector<8x512xf32>
    %cst_11 = arith.constant 0.000000e+00 : f32
    %15 = vector.broadcast %cst_11 : f32 to vector<8x512xf32>
    %16 = arith.maximumf %14, %15 : vector<8x512xf32>
    %17 = arith.truncf %16 : vector<8x512xf32> to vector<8x512xbf16>
    %c0_12 = arith.constant 0 : index
    %c0_13 = arith.constant 0 : index
    %18 = vector.load %arg6[%c0_12, %c0_13] : memref<512x128xbf16, #tpu.memory_space<vmem>>, vector<512x128xbf16>
    %cst_14 = arith.constant dense<0.000000e+00> : vector<8x128xf32>
    %19 = tpu.matmul %17, %18, %cst_14 {dimension_numbers = #tpu.dot_dimension_numbers<[1], [0], [0], [1], [0, 0, 1, 1], [], []>} : vector<8x512xbf16>, vector<512x128xbf16>, vector<8x128xf32> -> vector<8x128xf32>
    %c0_15 = arith.constant 0 : index
    %c0_16 = arith.constant 0 : index
    %20 = vector.load %arg7[%c0_15, %c0_16] : memref<1x128xf32, #tpu.memory_space<vmem>>, vector<1x128xf32>
    %21 = vector.broadcast %20 : vector<1x128xf32> to vector<8x128xf32>
    %22 = arith.addf %19, %21 : vector<8x128xf32>
    %c0_17 = arith.constant 0 : index
    %c0_18 = arith.constant 0 : index
    %23 = vector.load %arg8[%c0_17, %c0_18] : memref<8x128xf32, #tpu.memory_space<vmem>>, vector<8x128xf32>
    tpu.vector_store %arg8[%c0_17, %c0_18], %22 {strides = array<i32>} : memref<8x128xf32, #tpu.memory_space<vmem>>, vector<8x128xf32>,
    return
  }
  func.func @transform_0(%arg0: i32) -> (i32, i32) {
    %c0_i32 = arith.constant 0 : i32
    %c0_i32_0 = arith.constant 0 : i32
    return %arg0, %c0_i32 : i32, i32
  }
  func.func @transform_1(%arg0: i32) -> (i32, i32) {
    %c0_i32 = arith.constant 0 : i32
    %c0_i32_0 = arith.constant 0 : i32
    %c0_i32_1 = arith.constant 0 : i32
    return %c0_i32, %c0_i32_0 : i32, i32
  }
  func.func @transform_2(%arg0: i32) -> (i32, i32) {
    %c0_i32 = arith.constant 0 : i32
    %c0_i32_0 = arith.constant 0 : i32
    %c0_i32_1 = arith.constant 0 : i32
    return %c0_i32, %c0_i32_0 : i32, i32
  }
  func.func @transform_3(%arg0: i32) -> (i32, i32) {
    %c0_i32 = arith.constant 0 : i32
    %c0_i32_0 = arith.constant 0 : i32
    %c0_i32_1 = arith.constant 0 : i32
    return %c0_i32, %c0_i32_0 : i32, i32
  }
  func.func @transform_4(%arg0: i32) -> (i32, i32) {
    %c0_i32 = arith.constant 0 : i32
    %c0_i32_0 = arith.constant 0 : i32
    %c0_i32_1 = arith.constant 0 : i32
    return %c0_i32, %c0_i32_0 : i32, i32
  }
  func.func @transform_5(%arg0: i32) -> (i32, i32) {
    %c0_i32 = arith.constant 0 : i32
    %c0_i32_0 = arith.constant 0 : i32
    %c0_i32_1 = arith.constant 0 : i32
    return %c0_i32, %c0_i32_0 : i32, i32
  }
  func.func @transform_6(%arg0: i32) -> (i32, i32) {
    %c0_i32 = arith.constant 0 : i32
    %c0_i32_0 = arith.constant 0 : i32
    %c0_i32_1 = arith.constant 0 : i32
    return %c0_i32, %c0_i32_0 : i32, i32
  }
  func.func @transform_7(%arg0: i32) -> (i32, i32) {
    %c0_i32 = arith.constant 0 : i32
    %c0_i32_0 = arith.constant 0 : i32
    return %arg0, %c0_i32 : i32, i32
  }
}

</mosaic_0001>

<bundles_post_ra>
// kernel: tpu_custom_call.1
= control target key start
LH: loop header
LB: loop body
LE: loop exit
PB: predicated region body
PF: predicated region fallthrough
CT: control target
= control target key end

     0   :  { %12 = vsyncpa [#allocation3], 0  ;;  %s3807_s0 = inlined_call_operand.hbm [shape: f32[8,32], index: 0, kind: input, shape index: {}]   ;;  %s3808_s1 = inlined_call_operand.hbm [shape: bf16[32,1024], index: 1, kind: input, shape index: {}]   ;;  %s3809_s2 = inlined_call_operand.hbm [shape: f32[1,1024], index: 2, kind: input, shape index: {}]   ;;  %s3810_s3 = inlined_call_operand.hbm [shape: bf16[1024,512], index: 3, kind: input, shape index: {}]   ;;  %s3811_s4 = inlined_call_operand.vmem [shape: f32[1,512], index: 4, kind: input, shape index: {}]   ;;  %s3812_s5 = inlined_call_operand.hbm [shape: bf16[512,128], index: 5, kind: input, shape index: {}]   ;;  %s3813_s6 = inlined_call_operand.vmem [shape: f32[1,128], index: 6, kind: input, shape index: {}]   ;;  %s3814_s7 = inlined_call_operand.hbm [shape: f32[8,128], index: 7, kind: output, shape index: {}]  }
   0x1   :  { %13 = vsyncpa [#allocation6], 0 }
   0x2   :  { %14 = vsyncpa [#allocation9], 0 }
   0x3   :  { %15 = vsyncpa [#allocation4], 0  ;;  %s3621_s24 = smov [#allocation5]   ;;  %s3481_s28 = scalar_lea.hbm %s3808_s1, 2048 }
   0x4   :  { %s31_s25 = sshll.u32 %s3621_s24, 4  ;;  %p3482_p0 = scmp.ne.s32.totalorder %s3808_s1, %s3481_s28  ;;  %s32_s25 = int_to_ptr.vmem [resolvable:$true] %s31_s25 }
   0x5   :  { %p3485_p1 = scmp.lt.u32.totalorder %s3481_s28, %s3808_s1 }
   0x7   :  { %p3487_p2 = pnand %p3485_p1, %p3482_p0 }
   0x9   :  { %3490 = shalt.err (!%p3487_p2)
}
   0xa   :  { %s3491_s10 = scalar_lea.vmem %s32_s25, 2048  ;;  %p3496_p4 = scmp.lt.s32.totalorder %s32_s25, %s32_s25 }
   0xb   :  { %p3492_p3 = scmp.ne.s32.totalorder %s32_s25, %s3491_s10  ;;  %p3497_p5 = scmp.lt.s32.totalorder %s3491_s10, %s3491_s10 }
   0xd   :  { %p3498_p6 = por %p3497_p5, %p3496_p4 }
   0xf   :  { %p3499_p7 = pnand %p3498_p6, %p3492_p3 }
  0x11   :  { %3502 = shalt.err (!%p3499_p7)
}
  0x12   :  { %s3622_s11 = smov 512   ;;  %s3623_s12 = smov 32  }
  0x13   :  { %37 = dma.hbm_to_vmem [thread:$0]  %s3808_s1, 2048, %s32_s25, [#allocation6], %s3622_s11, %s3622_s11, %s3623_s12  }
  0x14   :  { %s3624_s15 = smov [#allocation8]   ;;  %s3503_s19 = scalar_lea.hbm %s3810_s3, 32768 }
  0x15   :  { %s53_s16 = sshll.u32 %s3624_s15, 4  ;;  %p3504_p8 = scmp.ne.s32.totalorder %s3810_s3, %s3503_s19  ;;  %s54_s16 = int_to_ptr.vmem [resolvable:$true] %s53_s16 }
  0x16   :  { %p3507_p9 = scmp.lt.u32.totalorder %s3503_s19, %s3810_s3 }
  0x18   :  { %p3509_p10 = pnand %p3507_p9, %p3504_p8 }
  0x1a   :  { %3512 = shalt.err (!%p3509_p10)
}
  0x1b   :  { %s3513_s24 = scalar_lea.vmem %s54_s16, 32768  ;;  %p3518_p12 = scmp.lt.s32.totalorder %s54_s16, %s54_s16 }
  0x1c   :  { %p3514_p11 = scmp.ne.s32.totalorder %s54_s16, %s3513_s24  ;;  %p3519_p13 = scmp.lt.s32.totalorder %s3513_s24, %s3513_s24 }
  0x1e   :  { %p3520_p0 = por %p3519_p13, %p3518_p12 }
  0x20   :  { %p3521_p1 = pnand %p3520_p0, %p3514_p11 }
  0x22   :  { %3524 = shalt.err (!%p3521_p1)
}
  0x23   :  { %s3625_s1 = smov 256   ;;  %s3626_s25 = smov 16  }
  0x24   :  { %59 = dma.hbm_to_vmem [thread:$0]  %s3810_s3, 32768, %s54_s16, [#allocation9], %s3625_s1, %s3625_s1, %s3626_s25  }
  0x25   :  { %s3627_s28 = smov [#allocation2]   ;;  %s3628_s30 = smov [#allocation7]  }
  0x26   :  { %s22_s29 = sshll.u32 %s3627_s28, 4  ;;  %s44_s8 = sshll.u32 %s3628_s30, 4  ;;  %s23_s29 = int_to_ptr.vmem [resolvable:$true] %s22_s29  ;;  %s45_s8 = int_to_ptr.vmem [resolvable:$true] %s44_s8 }
  0x27   :  { %s3525_s11 = scalar_lea.hbm %s3807_s0, 128 }
  0x28   :  { %p3526_p2 = scmp.ne.s32.totalorder %s3807_s0, %s3525_s11  ;;  %p3529_p3 = scmp.lt.u32.totalorder %s3525_s11, %s3807_s0 }
  0x2a   :  { %p3531_p4 = pnand %p3529_p3, %p3526_p2 }
  0x2c   :  { %3534 = shalt.err (!%p3531_p4)
}
  0x2d   :  { %s3535_s3 = scalar_lea.vmem %s23_s29, 128  ;;  %p3540_p6 = scmp.lt.s32.totalorder %s23_s29, %s23_s29 }
  0x2e   :  { %p3536_p5 = scmp.ne.s32.totalorder %s23_s29, %s3535_s3  ;;  %p3541_p7 = scmp.lt.s32.totalorder %s3535_s3, %s3535_s3 }
  0x30   :  { %p3542_p8 = por %p3541_p7, %p3540_p6 }
  0x32   :  { %p3543_p9 = pnand %p3542_p8, %p3536_p5 }
  0x34   :  { %3546 = shalt.err (!%p3543_p9)
}
  0x35   :  { %25 = dma.hbm_to_vmem [thread:$0]  %s3807_s0, 128, %s23_s29, [#allocation3]  }
  0x36   :  { %s3547_s20 = scalar_lea.hbm %s3809_s2, 128 }
  0x37   :  { %p3548_p10 = scmp.ne.s32.totalorder %s3809_s2, %s3547_s20  ;;  %p3551_p11 = scmp.lt.u32.totalorder %s3547_s20, %s3809_s2 }
  0x39   :  { %p3553_p12 = pnand %p3551_p11, %p3548_p10 }
  0x3b   :  { %3556 = shalt.err (!%p3553_p12)
}
  0x3c   :  { %s3557_s1 = scalar_lea.vmem %s45_s8, 128  ;;  %p3562_p0 = scmp.lt.s32.totalorder %s45_s8, %s45_s8 }
  0x3d   :  { %p3558_p13 = scmp.ne.s32.totalorder %s45_s8, %s3557_s1  ;;  %p3563_p1 = scmp.lt.s32.totalorder %s3557_s1, %s3557_s1 }
  0x3f   :  { %p3564_p2 = por %p3563_p1, %p3562_p0 }
  0x41   :  { %p3565_p3 = pnand %p3564_p2, %p3558_p13 }
  0x43   :  { %3568 = shalt.err (!%p3565_p3)
}
  0x44   :  { %47 = dma.hbm_to_vmem [thread:$0]  %s3809_s2, 128, %s45_s8, [#allocation6]  }
  0x45   :  { %s3629_s26 = smov [#allocation10]   ;;  %s3569_s30 = scalar_lea.hbm %s3812_s5, 4096 }
  0x46   :  { %s67_s27 = sshll.u32 %s3629_s26, 4  ;;  %p3570_p4 = scmp.ne.s32.totalorder %s3812_s5, %s3569_s30  ;;  %s68_s27 = int_to_ptr.vmem [resolvable:$true] %s67_s27 }
  0x47   :  { %p3573_p5 = scmp.lt.u32.totalorder %s3569_s30, %s3812_s5 }
  0x49   :  { %p3575_p6 = pnand %p3573_p5, %p3570_p4 }
  0x4b   :  { %3578 = shalt.err (!%p3575_p6)
}
  0x4c   :  { %s3579_s13 = scalar_lea.vmem %s68_s27, 4096  ;;  %p3584_p8 = scmp.lt.s32.totalorder %s68_s27, %s68_s27 }
  0x4d   :  { %p3580_p7 = scmp.ne.s32.totalorder %s68_s27, %s3579_s13  ;;  %p3585_p9 = scmp.lt.s32.totalorder %s3579_s13, %s3579_s13 }
  0x4f   :  { %p3586_p10 = por %p3585_p9, %p3584_p8 }
  0x51   :  { %p3587_p11 = pnand %p3586_p10, %p3580_p7 }
  0x53   :  { %3590 = shalt.err (!%p3587_p11)
}
  0x54   :  { %s3630_s2 = smov 64   ;;  %s3631_s8 = smov 4  }
  0x55   :  { %73 = dma.hbm_to_vmem [thread:$0]  %s3812_s5, 4096, %s68_s27, [#allocation9], %s3630_s2, %s3630_s2, %s3631_s8  }
  0x56   :  { %3613 = dma.done.wait [#allocation3], 128  }
  0x57   :  { %3614 = vsyncadd [#allocation3], 4294967168 }
  0x58   :  { %3615 = dma.done.wait [#allocation6], 2176  }
  0x59   :  { %3616 = vsyncadd [#allocation6], 4294965120 }
  0x5a   :  { %3617 = dma.done.wait [#allocation9], 36864  }
  0x5b   :  { %3618 = vsyncadd [#allocation9], 4294930432  ;;  %v3632_v0 = vmov 0   ;;  %v94_v1 = vld [vmem:[#allocation5] sm:$0xff]  ;;  %v95_v7 = vld [vmem:[#allocation5 + $0x8] sm:$0xff]  ;;  %vm232_vm0 = vcmask 261120  }
  0x5c   :  { %268 = vmatprep.mubr.bf16.mxu0 %v3632_v0  ;;  %309 = vmatprep.mubr.bf16.mxu1 %v3632_v0  ;;  %v98_v2 = vld [vmem:[#allocation5 + $0x20] sm:$0xff]  ;;  %v99_v9 = vld [vmem:[#allocation5 + $0x28] sm:$0xff]  ;;  %v96_v15 = vld [vmem:[#allocation5 + $0x10] sm:$0xff]  ;;  %s3633_s17 = smov [#allocation11]  }
  0x5d   :  { %v102_v3 = vld [vmem:[#allocation5 + $0x40] sm:$0xff]  ;;  %v2672_v4 = vcombine.high %v94_v1, %v98_v2  ;;  %v2671_v5 = vcombine.low %v94_v1, %v98_v2  ;;  %v103_v10 = vld [vmem:[#allocation5 + $0x48] sm:$0xff]  ;;  %v2674_v12 = vcombine.high %v95_v7, %v99_v9  ;;  %v2673_v13 = vcombine.low %v95_v7, %v99_v9  ;;  %v100_v16 = vld [vmem:[#allocation5 + $0x30] sm:$0xff]  ;;  %s2660_s18 = sshll.u32 %s3633_s17, 4  ;;  %s2661_s18 = int_to_ptr.vmem [resolvable:$true] %s2660_s18 }
  0x5e   :  { %v106_v6 = vld [vmem:[#allocation5 + $0x60] sm:$0xff]  ;;  %v107_v11 = vld [vmem:[#allocation5 + $0x68] sm:$0xff]  ;;  %v92_v18 = vld [vmem:[#allocation2] sm:$0xff]  ;;  %v2676_v21 = vcombine.high %v96_v15, %v100_v16  ;;  %v2675_v28 = vcombine.low %v96_v15, %v100_v16  ;;  %s3591_s19 = scalar_lea.vmem %s2661_s18, 128  ;;  %p3596_p13 = scmp.lt.s32.totalorder %s2661_s18, %s2661_s18 }
  0x5f   :  { %v2680_v8 = vcombine.high %v102_v3, %v106_v6  ;;  %236 = vmatprep.subr.bf16.mxu0 %v2672_v4  ;;  %v2682_v14 = vcombine.high %v103_v10, %v107_v11  ;;  %v2679_v17 = vcombine.low %v102_v3, %v106_v6  ;;  %v97_v19 = vld [vmem:[#allocation5 + $0x18] sm:$0xff]  ;;  %277 = vmatprep.subr.bf16.mxu1 %v2674_v12  ;;  %v104_v23 = vld [vmem:[#allocation5 + $0x50] sm:$0xff]  ;;  %p3592_p12 = scmp.ne.s32.totalorder %s2661_s18, %s3591_s19  ;;  %p3597_p0 = scmp.lt.s32.totalorder %s3591_s19, %s3591_s19 }
  0x60   :  { %237 = vmatpush1.bf16.msra.mxu0 %v2671_v5  ;;  %v101_v20 = vld [vmem:[#allocation5 + $0x38] sm:$0xff]  ;;  %278 = vmatpush1.bf16.msra.mxu1 %v2673_v13  ;;  %v2681_v22 = vcombine.low %v103_v10, %v107_v11  ;;  %v108_v24 = vld [vmem:[#allocation5 + $0x70] sm:$0xff]  ;;  %v93_v25 = vpack.c.bf16 %v92_v18, %v92_v18 }
  0x61   :  { %238 = vmatprep.subr.bf16.mxu0 %v2680_v8  ;;  %279 = vmatprep.subr.bf16.mxu1 %v2682_v14  ;;  %v2678_v26 = vcombine.high %v97_v19, %v101_v20  ;;  %v105_v27 = vld [vmem:[#allocation5 + $0x58] sm:$0xff]  ;;  %v2684_v30 = vcombine.high %v104_v23, %v108_v24  ;;  %v2677_v31 = vcombine.low %v97_v19, %v101_v20  ;;  %v3070_v36 = vld [vmem:[#allocation8 + $0xc] ss:$16 sps:$4 sm:$0xff]   ;;  %v3068_v39 = vld [vmem:[#allocation8 + $0x8] ss:$16 sps:$4 sm:$0xff]   ;;  %p3598_p1 = por %p3597_p0, %p3596_p13 }
  0x62   :  { %v109_v29 = vld [vmem:[#allocation5 + $0x78] sm:$0xff]  ;;  %v2683_v33 = vcombine.low %v104_v23, %v108_v24  ;;  %v3076_v40 = vld [vmem:[#allocation8 + $0x2c] ss:$16 sps:$4 sm:$0xff]   ;;  %v3074_v43 = vld [vmem:[#allocation8 + $0x28] ss:$16 sps:$4 sm:$0xff]  }
  0x63   :  { %v2686_v32 = vcombine.high %v105_v27, %v109_v29  ;;  %v3067_v34 = vld [vmem:[#allocation8 + $0x4] ss:$16 sps:$4 sm:$0xff]   ;;  %v2685_v35 = vcombine.low %v105_v27, %v109_v29  ;;  %v3065_v37 = vld [vmem:[#allocation8] ss:$16 sps:$4 sm:$0xff]   ;;  %v3082_v44 = vld [vmem:[#allocation8 + $0x4c] ss:$16 sps:$4 sm:$0xff]   ;;  %p3599_p2 = pnand %p3598_p1, %p3592_p12 }
  0x64   :  { %239 = vmatpush1.bf16.msra.mxu0 %v2679_v17  ;;  %280 = vmatpush1.bf16.msra.mxu1 %v2681_v22  ;;  %v3073_v38 = vld [vmem:[#allocation8 + $0x24] ss:$16 sps:$4 sm:$0xff]   ;;  %v3071_v41 = vld [vmem:[#allocation8 + $0x20] ss:$16 sps:$4 sm:$0xff]   ;;  %v3080_v47 = vld [vmem:[#allocation8 + $0x48] ss:$16 sps:$4 sm:$0xff]  }
  0x65   :  { %318 = vmatprep.subr.bf16.mxu0 %v2676_v21  ;;  %359 = vmatprep.subr.bf16.mxu1 %v2678_v26  ;;  %v3079_v42 = vld [vmem:[#allocation8 + $0x44] ss:$16 sps:$4 sm:$0xff]   ;;  %v3077_v45 = vld [vmem:[#allocation8 + $0x40] ss:$16 sps:$4 sm:$0xff]   ;;  %v3088_v48 = vld [vmem:[#allocation8 + $0x6c] ss:$16 sps:$4 sm:$0xff]  }
  0x66   :  { %v3085_v46 = vld [vmem:[#allocation8 + $0x64] ss:$16 sps:$4 sm:$0xff]   ;;  %v3083_v49 = vld [vmem:[#allocation8 + $0x60] ss:$16 sps:$4 sm:$0xff]   ;;  %v3086_v51 = vld [vmem:[#allocation8 + $0x68] ss:$16 sps:$4 sm:$0xff]  }
  0x67   :  { %2687 = vmatmul.mubr.msk.bf16.vlgmr.msra.gmra.mrb[0].mxu0 %vm232_vm0, %v93_v25  ;;  %2688 = vmatmul.mubr.msk.bf16.vlgmr.msra.gmra.mrb[0].mxu1 %vm232_vm0, %v93_v25  ;;  %v3091_v50 = vld [vmem:[#allocation8 + $0x84] ss:$16 sps:$4 sm:$0xff]   ;;  %v3094_v52 = vld [vmem:[#allocation8 + $0x8c] ss:$16 sps:$4 sm:$0xff]   ;;  %v3089_v53 = vld [vmem:[#allocation8 + $0x80] ss:$16 sps:$4 sm:$0xff]  }
  0x68   :  { %319 = vmatpush1.bf16.msra.mxu0 %v2675_v28  ;;  %350 = vmatprep.mubr.bf16.mxu0 %v3632_v0  ;;  %v3097_v54 = vld [vmem:[#allocation8 + $0xa4] ss:$16 sps:$4 sm:$0xff]   ;;  %v3092_v55 = vld [vmem:[#allocation8 + $0x88] ss:$16 sps:$4 sm:$0xff]   ;;  %v3100_v56 = vld [vmem:[#allocation8 + $0xac] ss:$16 sps:$4 sm:$0xff]  }
  0x69   :  { %320 = vmatprep.subr.bf16.mxu0 %v2684_v30  ;;  %360 = vmatpush1.bf16.msra.mxu1 %v2677_v31  ;;  %v3095_v57 = vld [vmem:[#allocation8 + $0xa0] ss:$16 sps:$4 sm:$0xff]   ;;  %v3103_v58 = vld [vmem:[#allocation8 + $0xc4] ss:$16 sps:$4 sm:$0xff]   ;;  %v3098_v59 = vld [vmem:[#allocation8 + $0xa8] ss:$16 sps:$4 sm:$0xff]  }
  0x6a   :  { %391 = vmatprep.mubr.bf16.mxu1 %v3632_v0  ;;  %361 = vmatprep.subr.bf16.mxu1 %v2686_v32  ;;  %v3106_v60 = vld [vmem:[#allocation8 + $0xcc] ss:$16 sps:$4 sm:$0xff]   ;;  %v3101_v61 = vld [vmem:[#allocation8 + $0xc0] ss:$16 sps:$4 sm:$0xff]   ;;  %v3104_v62 = vld [vmem:[#allocation8 + $0xc8] ss:$16 sps:$4 sm:$0xff]  }
  0x6b   :  { %v3109_v63 = vld [vmem:[#allocation8 + $0xe4] ss:$16 sps:$4 sm:$0xff]   ;;  %v3107_v0 = vld [vmem:[#allocation8 + $0xe0] ss:$16 sps:$4 sm:$0xff]   ;;  %v3112_v1 = vld [vmem:[#allocation8 + $0xec] ss:$16 sps:$4 sm:$0xff]  }
  0x6c   :  { %321 = vmatpush1.bf16.msra.mxu0 %v2683_v33  ;;  %v3115_v2 = vld [vmem:[#allocation8 + $0x104] ss:$16 sps:$4 sm:$0xff]   ;;  %v3110_v3 = vld [vmem:[#allocation8 + $0xe8] ss:$16 sps:$4 sm:$0xff]   ;;  %v3118_v4 = vld [vmem:[#allocation8 + $0x10c] ss:$16 sps:$4 sm:$0xff]  }
  0x6d   :  { %1974 = vmatprep.subr.bf16.mxu0 %v3067_v34  ;;  %362 = vmatpush1.bf16.msra.mxu1 %v2685_v35  ;;  %v3113_v5 = vld [vmem:[#allocation8 + $0x100] ss:$16 sps:$4 sm:$0xff]   ;;  %v3121_v6 = vld [vmem:[#allocation8 + $0x124] ss:$16 sps:$4 sm:$0xff]   ;;  %v3116_v7 = vld [vmem:[#allocation8 + $0x108] ss:$16 sps:$4 sm:$0xff]  }
  0x6e   :  { %2138 = vmatprep.subr.bf16.mxu1 %v3070_v36  ;;  %v3124_v8 = vld [vmem:[#allocation8 + $0x12c] ss:$16 sps:$4 sm:$0xff]   ;;  %v3119_v9 = vld [vmem:[#allocation8 + $0x120] ss:$16 sps:$4 sm:$0xff]   ;;  %v3127_v10 = vld [vmem:[#allocation8 + $0x144] ss:$16 sps:$4 sm:$0xff]  }
  0x6f   :  { %2689 = vmatmul.mubr.msk.bf16.vlgmr.msra.gmra.mrb[4].mxu0 %vm232_vm0, %v93_v25  ;;  %v3122_v11 = vld [vmem:[#allocation8 + $0x128] ss:$16 sps:$4 sm:$0xff]   ;;  %v3130_v12 = vld [vmem:[#allocation8 + $0x14c] ss:$16 sps:$4 sm:$0xff]   ;;  %v3125_v13 = vld [vmem:[#allocation8 + $0x140] ss:$16 sps:$4 sm:$0xff]  }
  0x70   :  { %1975 = vmatpush1.bf16.msra.mxu0 %v3065_v37  ;;  %2690 = vmatmul.mubr.msk.bf16.vlgmr.msra.gmra.mrb[4].mxu1 %vm232_vm0, %v93_v25  ;;  %v3133_v14 = vld [vmem:[#allocation8 + $0x164] ss:$16 sps:$4 sm:$0xff]   ;;  %v3128_v15 = vld [vmem:[#allocation8 + $0x148] ss:$16 sps:$4 sm:$0xff]   ;;  %v3136_v16 = vld [vmem:[#allocation8 + $0x16c] ss:$16 sps:$4 sm:$0xff]   ;;  %v112_v37 = vlaneseq }
  0x71   :  { %1976 = vmatprep.subr.bf16.mxu0 %v3073_v38  ;;  %2139 = vmatpush1.bf16.msra.mxu1 %v3068_v39  ;;  %v3131_v17 = vld [vmem:[#allocation8 + $0x160] ss:$16 sps:$4 sm:$0xff]   ;;  %v3139_v18 = vld [vmem:[#allocation8 + $0x184] ss:$16 sps:$4 sm:$0xff]   ;;  %v3134_v19 = vld [vmem:[#allocation8 + $0x168] ss:$16 sps:$4 sm:$0xff]  }
  0x72   :  { %2140 = vmatprep.subr.bf16.mxu1 %v3076_v40  ;;  %v3142_v20 = vld [vmem:[#allocation8 + $0x18c] ss:$16 sps:$4 sm:$0xff]   ;;  %v3137_v21 = vld [vmem:[#allocation8 + $0x180] ss:$16 sps:$4 sm:$0xff]   ;;  %v3145_v22 = vld [vmem:[#allocation8 + $0x1a4] ss:$16 sps:$4 sm:$0xff]  }
  0x73   :  { %v3140_v23 = vld [vmem:[#allocation8 + $0x188] ss:$16 sps:$4 sm:$0xff]   ;;  %v3148_v24 = vld [vmem:[#allocation8 + $0x1ac] ss:$16 sps:$4 sm:$0xff]   ;;  %v3143_v25 = vld [vmem:[#allocation8 + $0x1a0] ss:$16 sps:$4 sm:$0xff]  }
  0x74   :  { %1977 = vmatpush1.bf16.msra.mxu0 %v3071_v41  ;;  %v3146_v26 = vld [vmem:[#allocation8 + $0x1a8] ss:$16 sps:$4 sm:$0xff]   ;;  %v3151_v27 = vld [vmem:[#allocation8 + $0x1c4] ss:$16 sps:$4 sm:$0xff]   ;;  %v3154_v28 = vld [vmem:[#allocation8 + $0x1cc] ss:$16 sps:$4 sm:$0xff]  }
  0x75   :  { %1978 = vmatprep.subr.bf16.mxu0 %v3079_v42  ;;  %2141 = vmatpush1.bf16.msra.mxu1 %v3074_v43  ;;  %v3149_v29 = vld [vmem:[#allocation8 + $0x1c0] ss:$16 sps:$4 sm:$0xff]   ;;  %v3152_v30 = vld [vmem:[#allocation8 + $0x1c8] ss:$16 sps:$4 sm:$0xff]   ;;  %v3157_v31 = vld [vmem:[#allocation8 + $0x1e4] ss:$16 sps:$4 sm:$0xff]  }
  0x76   :  { %2142 = vmatprep.subr.bf16.mxu1 %v3082_v44  ;;  %v3160_v32 = vld [vmem:[#allocation8 + $0x1ec] ss:$16 sps:$4 sm:$0xff]   ;;  %v3155_v33 = vld [vmem:[#allocation8 + $0x1e0] ss:$16 sps:$4 sm:$0xff]   ;;  %v3158_v34 = vld [vmem:[#allocation8 + $0x1e8] ss:$16 sps:$4 sm:$0xff]  }
  0x77   :  { %v3163_v35 = vld [vmem:[#allocation8 + $0x204] ss:$16 sps:$4 sm:$0xff]   ;;  %v3166_v36 = vld [vmem:[#allocation8 + $0x20c] ss:$16 sps:$4 sm:$0xff]   ;;  %v3738_v38 = vshrl.u32 %v112_v37, 7 }
  0x78   :  { %1979 = vmatpush1.bf16.msra.mxu0 %v3077_v45  ;;  %v3741_v40 = vld [vmem:[#allocation7] sm:$0xff]  ;;  %v3211_v37 = vld [vmem:[#allocation8 + $0x304] ss:$16 sps:$4 sm:$0xff]  }
  0x79   :  { %1980 = vmatprep.subr.bf16.mxu0 %v3085_v46  ;;  %2143 = vmatpush1.bf16.msra.mxu1 %v3080_v47  ;;  %v114_v39 = vsub.s32 0, %v3738_v38  ;;  %v118_v41 = vsub.s32 1, %v3738_v38  ;;  %v126_v42 = vsub.s32 3, %v3738_v38 }
  0x7a   :  { %2144 = vmatprep.subr.bf16.mxu1 %v3088_v48 }
  0x7b   :  { %v115_v43 = vrot.slane %v3741_v40, %v114_v39  ;;  %v119_v44 = vrot.slane %v3741_v40, %v118_v41  ;;  %v127_v46 = vrot.slane %v3741_v40, %v126_v42 }
  0x7c   :  { %1981 = vmatpush1.bf16.msra.mxu0 %v3083_v49 }
  0x7d   :  { %1982 = vmatprep.subr.bf16.mxu0 %v3091_v50  ;;  %2145 = vmatpush1.bf16.msra.mxu1 %v3086_v51 }
  0x7e   :  { %2146 = vmatprep.subr.bf16.mxu1 %v3094_v52 }
  0x80   :  { %1983 = vmatpush1.bf16.msra.mxu0 %v3089_v53 }
  0x81   :  { %1984 = vmatprep.subr.bf16.mxu0 %v3097_v54  ;;  %2147 = vmatpush1.bf16.msra.mxu1 %v3092_v55 }
  0x82   :  { %2148 = vmatprep.subr.bf16.mxu1 %v3100_v56 }
  0x84   :  { %1985 = vmatpush1.bf16.msra.mxu0 %v3095_v57 }
  0x85   :  { %1986 = vmatprep.subr.bf16.mxu0 %v3103_v58  ;;  %2149 = vmatpush1.bf16.msra.mxu1 %v3098_v59 }
  0x86   :  { %2150 = vmatprep.subr.bf16.mxu1 %v3106_v60  ;;  %v3161_v60 = vld [vmem:[#allocation8 + $0x200] ss:$16 sps:$4 sm:$0xff]  }
  0x88   :  { %1987 = vmatpush1.bf16.msra.mxu0 %v3101_v61  ;;  %v3164_v61 = vld [vmem:[#allocation8 + $0x208] ss:$16 sps:$4 sm:$0xff]  }
  0x89   :  { %1988 = vmatprep.subr.bf16.mxu0 %v3109_v63  ;;  %2151 = vmatpush1.bf16.msra.mxu1 %v3104_v62 }
  0x8a   :  { %2152 = vmatprep.subr.bf16.mxu1 %v3112_v1  ;;  %v3172_v1 = vld [vmem:[#allocation8 + $0x22c] ss:$16 sps:$4 sm:$0xff]  }
  0x8c   :  { %1989 = vmatpush1.bf16.msra.mxu0 %v3107_v0  ;;  %v3169_v0 = vld [vmem:[#allocation8 + $0x224] ss:$16 sps:$4 sm:$0xff]  }
  0x8d   :  { %1990 = vmatprep.subr.bf16.mxu0 %v3115_v2  ;;  %2153 = vmatpush1.bf16.msra.mxu1 %v3110_v3 }
  0x8e   :  { %2154 = vmatprep.subr.bf16.mxu1 %v3118_v4 }
  0x90   :  { %1991 = vmatpush1.bf16.msra.mxu0 %v3113_v5  ;;  %v3167_v5 = vld [vmem:[#allocation8 + $0x220] ss:$16 sps:$4 sm:$0xff]  }
  0x91   :  { %1992 = vmatprep.subr.bf16.mxu0 %v3121_v6  ;;  %2155 = vmatpush1.bf16.msra.mxu1 %v3116_v7  ;;  %v3170_v6 = vld [vmem:[#allocation8 + $0x228] ss:$16 sps:$4 sm:$0xff]  }
  0x92   :  { %2156 = vmatprep.subr.bf16.mxu1 %v3124_v8  ;;  %v3175_v8 = vld [vmem:[#allocation8 + $0x244] ss:$16 sps:$4 sm:$0xff]  }
  0x94   :  { %1993 = vmatpush1.bf16.msra.mxu0 %v3119_v9  ;;  %v3178_v9 = vld [vmem:[#allocation8 + $0x24c] ss:$16 sps:$4 sm:$0xff]  }
  0x95   :  { %1994 = vmatprep.subr.bf16.mxu0 %v3127_v10  ;;  %2157 = vmatpush1.bf16.msra.mxu1 %v3122_v11  ;;  %v3173_v11 = vld [vmem:[#allocation8 + $0x240] ss:$16 sps:$4 sm:$0xff]  }
  0x96   :  { %2158 = vmatprep.subr.bf16.mxu1 %v3130_v12  ;;  %v3176_v12 = vld [vmem:[#allocation8 + $0x248] ss:$16 sps:$4 sm:$0xff]  }
  0x98   :  { %1995 = vmatpush1.bf16.msra.mxu0 %v3125_v13  ;;  %v3181_v13 = vld [vmem:[#allocation8 + $0x264] ss:$16 sps:$4 sm:$0xff]  }
  0x99   :  { %1996 = vmatprep.subr.bf16.mxu0 %v3133_v14  ;;  %2159 = vmatpush1.bf16.msra.mxu1 %v3128_v15  ;;  %v3184_v14 = vld [vmem:[#allocation8 + $0x26c] ss:$16 sps:$4 sm:$0xff]   ;;  %v3179_v15 = vld [vmem:[#allocation8 + $0x260] ss:$16 sps:$4 sm:$0xff]  }
  0x9a   :  { %2160 = vmatprep.subr.bf16.mxu1 %v3136_v16  ;;  %v3182_v16 = vld [vmem:[#allocation8 + $0x268] ss:$16 sps:$4 sm:$0xff]  }
  0x9c   :  { %1997 = vmatpush1.bf16.msra.mxu0 %v3131_v17  ;;  %v3187_v17 = vld [vmem:[#allocation8 + $0x284] ss:$16 sps:$4 sm:$0xff]  }
  0x9d   :  { %1998 = vmatprep.subr.bf16.mxu0 %v3139_v18  ;;  %2161 = vmatpush1.bf16.msra.mxu1 %v3134_v19  ;;  %v3190_v18 = vld [vmem:[#allocation8 + $0x28c] ss:$16 sps:$4 sm:$0xff]   ;;  %v3185_v19 = vld [vmem:[#allocation8 + $0x280] ss:$16 sps:$4 sm:$0xff]  }
  0x9e   :  { %2162 = vmatprep.subr.bf16.mxu1 %v3142_v20  ;;  %v3188_v20 = vld [vmem:[#allocation8 + $0x288] ss:$16 sps:$4 sm:$0xff]  }
  0xa0   :  { %1999 = vmatpush1.bf16.msra.mxu0 %v3137_v21  ;;  %v3193_v21 = vld [vmem:[#allocation8 + $0x2a4] ss:$16 sps:$4 sm:$0xff]  }
  0xa1   :  { %2000 = vmatprep.subr.bf16.mxu0 %v3145_v22  ;;  %2163 = vmatpush1.bf16.msra.mxu1 %v3140_v23  ;;  %v3196_v22 = vld [vmem:[#allocation8 + $0x2ac] ss:$16 sps:$4 sm:$0xff]   ;;  %v3191_v23 = vld [vmem:[#allocation8 + $0x2a0] ss:$16 sps:$4 sm:$0xff]  }
  0xa2   :  { %2164 = vmatprep.subr.bf16.mxu1 %v3148_v24  ;;  %v3194_v24 = vld [vmem:[#allocation8 + $0x2a8] ss:$16 sps:$4 sm:$0xff]  }
  0xa4   :  { %2001 = vmatpush1.bf16.msra.mxu0 %v3143_v25 }
  0xa5   :  { %2165 = vmatpush1.bf16.msra.mxu1 %v3146_v26  ;;  %2002 = vmatprep.subr.bf16.mxu0 %v3151_v27  ;;  %v3199_v26 = vld [vmem:[#allocation8 + $0x2c4] ss:$16 sps:$4 sm:$0xff]   ;;  %v3202_v27 = vld [vmem:[#allocation8 + $0x2cc] ss:$16 sps:$4 sm:$0xff]  }
  0xa6   :  { %2166 = vmatprep.subr.bf16.mxu1 %v3154_v28 }
  0xa8   :  { %2003 = vmatpush1.bf16.msra.mxu0 %v3149_v29 }
  0xa9   :  { %2167 = vmatpush1.bf16.msra.mxu1 %v3152_v30  ;;  %2004 = vmatprep.subr.bf16.mxu0 %v3157_v31  ;;  %v3197_v31 = vld [vmem:[#allocation8 + $0x2c0] ss:$16 sps:$4 sm:$0xff]  }
  0xaa   :  { %2168 = vmatprep.subr.bf16.mxu1 %v3160_v32  ;;  %v3200_v32 = vld [vmem:[#allocation8 + $0x2c8] ss:$16 sps:$4 sm:$0xff]  }
  0xac   :  { %2005 = vmatpush1.bf16.msra.mxu0 %v3155_v33  ;;  %v3205_v33 = vld [vmem:[#allocation8 + $0x2e4] ss:$16 sps:$4 sm:$0xff]  }
  0xad   :  { %2169 = vmatpush1.bf16.msra.mxu1 %v3158_v34  ;;  %2015 = vmatprep.subr.bf16.mxu0 %v3163_v35  ;;  %v3208_v34 = vld [vmem:[#allocation8 + $0x2ec] ss:$16 sps:$4 sm:$0xff]   ;;  %v3203_v35 = vld [vmem:[#allocation8 + $0x2e0] ss:$16 sps:$4 sm:$0xff]  }
  0xae   :  { %2179 = vmatprep.subr.bf16.mxu1 %v3166_v36  ;;  %v3206_v36 = vld [vmem:[#allocation8 + $0x2e8] ss:$16 sps:$4 sm:$0xff]  }
 0x13a   :  { %v270_v45 = vpop.f32.mrb[0].mxu0  ;;  %v3754_v51 = vpop.f32.mrb[0].mxu1 }
 0x13b   :  { %v271_v47 = vadd.f32 %v270_v45, %v115_v43  ;;  %v272_v48 = vpop.f32.mrb[1].mxu0  ;;  %v313_v54 = vpop.f32.mrb[1].mxu1  ;;  %v3214_v43 = vld [vmem:[#allocation8 + $0x30c] ss:$16 sps:$4 sm:$0xff]   ;;  %v3212_v45 = vld [vmem:[#allocation8 + $0x308] ss:$16 sps:$4 sm:$0xff]  }
 0x13c   :  { %v273_v49 = vadd.f32 %v272_v48, %v119_v44  ;;  %v274_v50 = vpop.f32.mrb[2].mxu0  ;;  %v314_v56 = vadd.f32 %v313_v54, %v127_v46  ;;  %v315_v57 = vpop.f32.mrb[2].mxu1  ;;  %v3209_v44 = vld [vmem:[#allocation8 + $0x300] ss:$16 sps:$4 sm:$0xff]   ;;  %v3217_v46 = vld [vmem:[#allocation8 + $0x324] ss:$16 sps:$4 sm:$0xff]  }
 0x13d   :  { %v400_v52 = vmax.f32 %v271_v47, 0.0  ;;  %v275_v53 = vpop.f32.mrb[3].mxu0  ;;  %v316_v58 = vpop.f32.mrb[3].mxu1  ;;  %v3220_v47 = vld [vmem:[#allocation8 + $0x32c] ss:$16 sps:$4 sm:$0xff]  }
 0x13e   :  { %v401_v55 = vmax.f32 %v273_v49, 0.0  ;;  %v403_v62 = vmax.f32 %v314_v56, 0.0  ;;  %v3215_v48 = vld [vmem:[#allocation8 + $0x320] ss:$16 sps:$4 sm:$0xff]   ;;  %v3218_v49 = vld [vmem:[#allocation8 + $0x328] ss:$16 sps:$4 sm:$0xff]  }
 0x13f   :  { %v408_v63 = vpack.c.bf16 %v400_v52, %v400_v52  ;;  %v3223_v50 = vld [vmem:[#allocation8 + $0x344] ss:$16 sps:$4 sm:$0xff]   ;;  %v3226_v52 = vld [vmem:[#allocation8 + $0x34c] ss:$16 sps:$4 sm:$0xff]   ;;  %v3221_v53 = vld [vmem:[#allocation8 + $0x340] ss:$16 sps:$4 sm:$0xff]  }
 0x140   :  { %v409_v59 = vpack.c.bf16 %v401_v55, %v401_v55  ;;  %v411_v2 = vpack.c.bf16 %v403_v62, %v403_v62  ;;  %v3224_v54 = vld [vmem:[#allocation8 + $0x348] ss:$16 sps:$4 sm:$0xff]   ;;  %v3229_v55 = vld [vmem:[#allocation8 + $0x364] ss:$16 sps:$4 sm:$0xff]   ;;  %v3232_v56 = vld [vmem:[#allocation8 + $0x36c] ss:$16 sps:$4 sm:$0xff]  }
 0x141   :  { %v3227_v57 = vld [vmem:[#allocation8 + $0x360] ss:$16 sps:$4 sm:$0xff]   ;;  %v3230_v58 = vld [vmem:[#allocation8 + $0x368] ss:$16 sps:$4 sm:$0xff]  }
 0x142   :  { %2006 = vmatprep.mubr.bf16.mxu0 %v409_v59  ;;  %2170 = vmatprep.mubr.bf16.mxu1 %v409_v59  ;;  %v3756_v3 = vpop.f32.mrb[4].mxu0  ;;  %v3235_v59 = vld [vmem:[#allocation8 + $0x384] ss:$16 sps:$4 sm:$0xff]   ;;  %v3233_v62 = vld [vmem:[#allocation8 + $0x380] ss:$16 sps:$4 sm:$0xff]  }
 0x143   :  { %2007 = vmatmul.mubr.bf16.vlgmr.msra.gmra.mrb[8].mxu0 %v408_v63  ;;  %2171 = vmatmul.mubr.bf16.vlgmr.msra.gmra.mrb[8].mxu1 %v408_v63  ;;  %v3758_v4 = vpop.f32.mrb[5].mxu0  ;;  %v3760_v25 = vpop.f32.mrb[4].mxu1  ;;  %v3236_v63 = vld [vmem:[#allocation8 + $0x388] ss:$16 sps:$4 sm:$0xff]  }
 0x144   :  { %2016 = vmatpush1.bf16.msra.mxu0 %v3161_v60  ;;  %2180 = vmatpush1.bf16.msra.mxu1 %v3164_v61  ;;  %v356_v7 = vpop.f32.mrb[6].mxu0  ;;  %v3762_v28 = vpop.f32.mrb[5].mxu1  ;;  %v3238_v60 = vld [vmem:[#allocation8 + $0x38c] ss:$16 sps:$4 sm:$0xff]   ;;  %v122_v61 = vsub.s32 2, %v3738_v38 }
 0x145   :  { %2017 = vmatprep.subr.bf16.mxu0 %v3169_v0  ;;  %2181 = vmatprep.subr.bf16.mxu1 %v3172_v1  ;;  %v357_v10 = vpop.f32.mrb[7].mxu0  ;;  %v397_v29 = vpop.f32.mrb[6].mxu1  ;;  %v3241_v0 = vld [vmem:[#allocation8 + $0x3a4] ss:$16 sps:$4 sm:$0xff]   ;;  %v3244_v1 = vld [vmem:[#allocation8 + $0x3ac] ss:$16 sps:$4 sm:$0xff]  }
 0x146   :  { %2047 = vmatprep.mubr.bf16.mxu0 %v411_v2  ;;  %2211 = vmatprep.mubr.bf16.mxu1 %v411_v2  ;;  %v398_v30 = vpop.f32.mrb[7].mxu1  ;;  %v134_v2 = vsub.s32 5, %v3738_v38  ;;  %v3242_v7 = vld [vmem:[#allocation8 + $0x3a8] ss:$16 sps:$4 sm:$0xff]   ;;  %v3263_v29 = vld [vmem:[#allocation8 + $0x420] ss:$16 sps:$4 sm:$0xff]  }
 0x147   :  { %v3266_v30 = vld [vmem:[#allocation8 + $0x428] ss:$16 sps:$4 sm:$0xff]  }
 0x148   :  { %2018 = vmatpush1.bf16.msra.mxu0 %v3167_v5  ;;  %2182 = vmatpush1.bf16.msra.mxu1 %v3170_v6  ;;  %v123_v5 = vrot.slane %v3741_v40, %v122_v61  ;;  %v3239_v6 = vld [vmem:[#allocation8 + $0x3a0] ss:$16 sps:$4 sm:$0xff]   ;;  %v135_v10 = vrot.slane %v3741_v40, %v134_v2  ;;  %v3313_v2 = vld [vmem:[#allocation8 + $0x524] ss:$16 sps:$4 sm:$0xff]  }
 0x149   :  { %2019 = vmatprep.subr.bf16.mxu0 %v3175_v8  ;;  %2183 = vmatprep.subr.bf16.mxu1 %v3178_v9  ;;  %v3247_v8 = vld [vmem:[#allocation8 + $0x3c4] ss:$16 sps:$4 sm:$0xff]   ;;  %v3250_v9 = vld [vmem:[#allocation8 + $0x3cc] ss:$16 sps:$4 sm:$0xff]  }
 0x14c   :  { %2020 = vmatpush1.bf16.msra.mxu0 %v3173_v11  ;;  %2184 = vmatpush1.bf16.msra.mxu1 %v3176_v12  ;;  %v312_v11 = vadd.f32 %v3754_v51, %v123_v5  ;;  %v3245_v12 = vld [vmem:[#allocation8 + $0x3c0] ss:$16 sps:$4 sm:$0xff]   ;;  %v3316_v5 = vld [vmem:[#allocation8 + $0x52c] ss:$16 sps:$4 sm:$0xff]  }
 0x14d   :  { %2021 = vmatprep.subr.bf16.mxu0 %v3181_v13  ;;  %2185 = vmatprep.subr.bf16.mxu1 %v3184_v14  ;;  %v3248_v13 = vld [vmem:[#allocation8 + $0x3c8] ss:$16 sps:$4 sm:$0xff]   ;;  %v3253_v14 = vld [vmem:[#allocation8 + $0x3e4] ss:$16 sps:$4 sm:$0xff]  }
 0x150   :  { %2022 = vmatpush1.bf16.msra.mxu0 %v3179_v15  ;;  %2186 = vmatpush1.bf16.msra.mxu1 %v3182_v16  ;;  %v3256_v15 = vld [vmem:[#allocation8 + $0x3ec] ss:$16 sps:$4 sm:$0xff]   ;;  %v355_v16 = vadd.f32 %v3758_v4, %v135_v10  ;;  %v3317_v10 = vld [vmem:[#allocation8 + $0x540] ss:$16 sps:$4 sm:$0xff]  }
 0x151   :  { %2023 = vmatprep.subr.bf16.mxu0 %v3187_v17  ;;  %2187 = vmatprep.subr.bf16.mxu1 %v3190_v18  ;;  %v402_v17 = vmax.f32 %v312_v11, 0.0  ;;  %v3251_v18 = vld [vmem:[#allocation8 + $0x3e0] ss:$16 sps:$4 sm:$0xff]   ;;  %v3320_v11 = vld [vmem:[#allocation8 + $0x548] ss:$16 sps:$4 sm:$0xff]  }
 0x152   :  { %v405_v51 = vmax.f32 %v355_v16, 0.0  ;;  %v3331_v16 = vld [vmem:[#allocation8 + $0x584] ss:$16 sps:$4 sm:$0xff]  }
 0x154   :  { %2024 = vmatpush1.bf16.msra.mxu0 %v3185_v19  ;;  %2188 = vmatpush1.bf16.msra.mxu1 %v3188_v20  ;;  %v3254_v19 = vld [vmem:[#allocation8 + $0x3e8] ss:$16 sps:$4 sm:$0xff]   ;;  %v3259_v20 = vld [vmem:[#allocation8 + $0x404] ss:$16 sps:$4 sm:$0xff]   ;;  %v413_v4 = vpack.c.bf16 %v405_v51, %v405_v51  ;;  %v3340_v51 = vld [vmem:[#allocation8 + $0x5ac] ss:$16 sps:$4 sm:$0xff]  }
 0x155   :  { %2025 = vmatprep.subr.bf16.mxu0 %v3193_v21  ;;  %2189 = vmatprep.subr.bf16.mxu1 %v3196_v22  ;;  %v3262_v21 = vld [vmem:[#allocation8 + $0x40c] ss:$16 sps:$4 sm:$0xff]   ;;  %v410_v22 = vpack.c.bf16 %v402_v17, %v402_v17 }
 0x156   :  { %v3334_v17 = vld [vmem:[#allocation8 + $0x58c] ss:$16 sps:$4 sm:$0xff]  }
 0x158   :  { %2026 = vmatpush1.bf16.msra.mxu0 %v3191_v23  ;;  %2190 = vmatpush1.bf16.msra.mxu1 %v3194_v24  ;;  %v3257_v23 = vld [vmem:[#allocation8 + $0x400] ss:$16 sps:$4 sm:$0xff]   ;;  %v3260_v24 = vld [vmem:[#allocation8 + $0x408] ss:$16 sps:$4 sm:$0xff]  }
 0x159   :  { %2027 = vmatprep.subr.bf16.mxu0 %v3199_v26  ;;  %2191 = vmatprep.subr.bf16.mxu1 %v3202_v27  ;;  %v3265_v26 = vld [vmem:[#allocation8 + $0x424] ss:$16 sps:$4 sm:$0xff]   ;;  %v3268_v27 = vld [vmem:[#allocation8 + $0x42c] ss:$16 sps:$4 sm:$0xff]  }
 0x15c   :  { %2028 = vmatpush1.bf16.msra.mxu0 %v3197_v31  ;;  %2192 = vmatpush1.bf16.msra.mxu1 %v3200_v32  ;;  %v3271_v31 = vld [vmem:[#allocation8 + $0x444] ss:$16 sps:$4 sm:$0xff]   ;;  %v3274_v32 = vld [vmem:[#allocation8 + $0x44c] ss:$16 sps:$4 sm:$0xff]  }
 0x15d   :  { %2029 = vmatprep.subr.bf16.mxu0 %v3205_v33  ;;  %2193 = vmatprep.subr.bf16.mxu1 %v3208_v34  ;;  %v3269_v33 = vld [vmem:[#allocation8 + $0x440] ss:$16 sps:$4 sm:$0xff]   ;;  %v3272_v34 = vld [vmem:[#allocation8 + $0x448] ss:$16 sps:$4 sm:$0xff]  }
 0x160   :  { %2030 = vmatpush1.bf16.msra.mxu0 %v3203_v35  ;;  %2194 = vmatpush1.bf16.msra.mxu1 %v3206_v36  ;;  %v3277_v35 = vld [vmem:[#allocation8 + $0x464] ss:$16 sps:$4 sm:$0xff]   ;;  %v3280_v36 = vld [vmem:[#allocation8 + $0x46c] ss:$16 sps:$4 sm:$0xff]  }
 0x161   :  { %2031 = vmatprep.subr.bf16.mxu0 %v3211_v37  ;;  %2195 = vmatprep.subr.bf16.mxu1 %v3214_v43  ;;  %v3275_v37 = vld [vmem:[#allocation8 + $0x460] ss:$16 sps:$4 sm:$0xff]   ;;  %v3278_v43 = vld [vmem:[#allocation8 + $0x468] ss:$16 sps:$4 sm:$0xff]  }
 0x164   :  { %2032 = vmatpush1.bf16.msra.mxu0 %v3209_v44  ;;  %2196 = vmatpush1.bf16.msra.mxu1 %v3212_v45  ;;  %v3283_v44 = vld [vmem:[#allocation8 + $0x484] ss:$16 sps:$4 sm:$0xff]   ;;  %v3286_v45 = vld [vmem:[#allocation8 + $0x48c] ss:$16 sps:$4 sm:$0xff]  }
 0x165   :  { %2033 = vmatprep.subr.bf16.mxu0 %v3217_v46  ;;  %2197 = vmatprep.subr.bf16.mxu1 %v3220_v47  ;;  %v3281_v46 = vld [vmem:[#allocation8 + $0x480] ss:$16 sps:$4 sm:$0xff]   ;;  %v3284_v47 = vld [vmem:[#allocation8 + $0x488] ss:$16 sps:$4 sm:$0xff]  }
 0x168   :  { %2034 = vmatpush1.bf16.msra.mxu0 %v3215_v48  ;;  %2198 = vmatpush1.bf16.msra.mxu1 %v3218_v49  ;;  %v3289_v48 = vld [vmem:[#allocation8 + $0x4a4] ss:$16 sps:$4 sm:$0xff]   ;;  %v3292_v49 = vld [vmem:[#allocation8 + $0x4ac] ss:$16 sps:$4 sm:$0xff]  }
 0x169   :  { %2035 = vmatprep.subr.bf16.mxu0 %v3223_v50  ;;  %2199 = vmatprep.subr.bf16.mxu1 %v3226_v52  ;;  %v3287_v50 = vld [vmem:[#allocation8 + $0x4a0] ss:$16 sps:$4 sm:$0xff]   ;;  %v3290_v52 = vld [vmem:[#allocation8 + $0x4a8] ss:$16 sps:$4 sm:$0xff]  }
 0x16c   :  { %2036 = vmatpush1.bf16.msra.mxu0 %v3221_v53  ;;  %2200 = vmatpush1.bf16.msra.mxu1 %v3224_v54  ;;  %v3295_v53 = vld [vmem:[#allocation8 + $0x4c4] ss:$16 sps:$4 sm:$0xff]   ;;  %v3298_v54 = vld [vmem:[#allocation8 + $0x4cc] ss:$16 sps:$4 sm:$0xff]  }
 0x16d   :  { %2037 = vmatprep.subr.bf16.mxu0 %v3229_v55  ;;  %2201 = vmatprep.subr.bf16.mxu1 %v3232_v56  ;;  %v3293_v55 = vld [vmem:[#allocation8 + $0x4c0] ss:$16 sps:$4 sm:$0xff]   ;;  %v3296_v56 = vld [vmem:[#allocation8 + $0x4c8] ss:$16 sps:$4 sm:$0xff]  }
 0x170   :  { %2038 = vmatpush1.bf16.msra.mxu0 %v3227_v57  ;;  %2202 = vmatpush1.bf16.msra.mxu1 %v3230_v58  ;;  %v3301_v57 = vld [vmem:[#allocation8 + $0x4e4] ss:$16 sps:$4 sm:$0xff]   ;;  %v3304_v58 = vld [vmem:[#allocation8 + $0x4ec] ss:$16 sps:$4 sm:$0xff]  }
 0x171   :  { %2039 = vmatprep.subr.bf16.mxu0 %v3235_v59  ;;  %2203 = vmatprep.subr.bf16.mxu1 %v3238_v60  ;;  %v3299_v59 = vld [vmem:[#allocation8 + $0x4e0] ss:$16 sps:$4 sm:$0xff]   ;;  %v3302_v60 = vld [vmem:[#allocation8 + $0x4e8] ss:$16 sps:$4 sm:$0xff]  }
 0x174   :  { %2040 = vmatpush1.bf16.msra.mxu0 %v3233_v62  ;;  %2204 = vmatpush1.bf16.msra.mxu1 %v3236_v63  ;;  %v3307_v62 = vld [vmem:[#allocation8 + $0x504] ss:$16 sps:$4 sm:$0xff]   ;;  %v3310_v63 = vld [vmem:[#allocation8 + $0x50c] ss:$16 sps:$4 sm:$0xff]  }
 0x175   :  { %2041 = vmatprep.subr.bf16.mxu0 %v3241_v0  ;;  %2205 = vmatprep.subr.bf16.mxu1 %v3244_v1  ;;  %v3305_v0 = vld [vmem:[#allocation8 + $0x500] ss:$16 sps:$4 sm:$0xff]   ;;  %v3308_v1 = vld [vmem:[#allocation8 + $0x508] ss:$16 sps:$4 sm:$0xff]  }
 0x178   :  { %2042 = vmatpush1.bf16.msra.mxu0 %v3239_v6  ;;  %2206 = vmatpush1.bf16.msra.mxu1 %v3242_v7  ;;  %v3311_v6 = vld [vmem:[#allocation8 + $0x520] ss:$16 sps:$4 sm:$0xff]   ;;  %v3314_v7 = vld [vmem:[#allocation8 + $0x528] ss:$16 sps:$4 sm:$0xff]  }
 0x179   :  { %2043 = vmatprep.subr.bf16.mxu0 %v3247_v8  ;;  %2207 = vmatprep.subr.bf16.mxu1 %v3250_v9  ;;  %v3319_v8 = vld [vmem:[#allocation8 + $0x544] ss:$16 sps:$4 sm:$0xff]   ;;  %v3322_v9 = vld [vmem:[#allocation8 + $0x54c] ss:$16 sps:$4 sm:$0xff]  }
 0x17c   :  { %2044 = vmatpush1.bf16.msra.mxu0 %v3245_v12  ;;  %2208 = vmatpush1.bf16.msra.mxu1 %v3248_v13  ;;  %v3325_v12 = vld [vmem:[#allocation8 + $0x564] ss:$16 sps:$4 sm:$0xff]   ;;  %v3328_v13 = vld [vmem:[#allocation8 + $0x56c] ss:$16 sps:$4 sm:$0xff]  }
 0x17d   :  { %2045 = vmatprep.subr.bf16.mxu0 %v3253_v14  ;;  %2209 = vmatprep.subr.bf16.mxu1 %v3256_v15  ;;  %v3323_v14 = vld [vmem:[#allocation8 + $0x560] ss:$16 sps:$4 sm:$0xff]   ;;  %v3326_v15 = vld [vmem:[#allocation8 + $0x568] ss:$16 sps:$4 sm:$0xff]  }
 0x180   :  { %2046 = vmatpush1.bf16.msra.mxu0 %v3251_v18  ;;  %2210 = vmatpush1.bf16.msra.mxu1 %v3254_v19  ;;  %v130_v18 = vsub.s32 4, %v3738_v38  ;;  %v3329_v19 = vld [vmem:[#allocation8 + $0x580] ss:$16 sps:$4 sm:$0xff]  }
 0x181   :  { %2056 = vmatprep.subr.bf16.mxu0 %v3259_v20  ;;  %2220 = vmatprep.subr.bf16.mxu1 %v3262_v21  ;;  %v3332_v20 = vld [vmem:[#allocation8 + $0x588] ss:$16 sps:$4 sm:$0xff]   ;;  %v3337_v21 = vld [vmem:[#allocation8 + $0x5a4] ss:$16 sps:$4 sm:$0xff]  }
 0x183   :  { %2048 = vmatmul.mubr.bf16.vlgmr.msra.gmra.mrb[8].mxu0 %v410_v22  ;;  %2212 = vmatmul.mubr.bf16.vlgmr.msra.gmra.mrb[8].mxu1 %v410_v22  ;;  %v142_v22 = vsub.s32 7, %v3738_v38 }
 0x184   :  { %2057 = vmatpush1.bf16.msra.mxu0 %v3257_v23  ;;  %2221 = vmatpush1.bf16.msra.mxu1 %v3260_v24  ;;  %v131_v23 = vrot.slane %v3741_v40, %v130_v18  ;;  %v3335_v24 = vld [vmem:[#allocation8 + $0x5a0] ss:$16 sps:$4 sm:$0xff]   ;;  %v3406_v18 = vld [vmem:[#allocation8 + $0x70c] ss:$16 sps:$4 sm:$0xff]  }
 0x185   :  { %2058 = vmatprep.subr.bf16.mxu0 %v3265_v26  ;;  %2222 = vmatprep.subr.bf16.mxu1 %v3268_v27  ;;  %v3338_v26 = vld [vmem:[#allocation8 + $0x5a8] ss:$16 sps:$4 sm:$0xff]   ;;  %v3343_v27 = vld [vmem:[#allocation8 + $0x5c4] ss:$16 sps:$4 sm:$0xff]  }
 0x186   :  { %2088 = vmatprep.mubr.bf16.mxu0 %v413_v4  ;;  %2252 = vmatprep.mubr.bf16.mxu1 %v413_v4  ;;  %v3346_v4 = vld [vmem:[#allocation8 + $0x5cc] ss:$16 sps:$4 sm:$0xff]  }
 0x188   :  { %2059 = vmatpush1.bf16.msra.mxu0 %v3263_v29  ;;  %2223 = vmatpush1.bf16.msra.mxu1 %v3266_v30  ;;  %v143_v29 = vrot.slane %v3741_v40, %v142_v22  ;;  %v353_v30 = vadd.f32 %v3756_v3, %v131_v23  ;;  %v3407_v22 = vld [vmem:[#allocation8 + $0x720] ss:$16 sps:$4 sm:$0xff]   ;;  %v3410_v23 = vld [vmem:[#allocation8 + $0x728] ss:$16 sps:$4 sm:$0xff]  }
 0x189   :  { %2060 = vmatprep.subr.bf16.mxu0 %v3271_v31  ;;  %2224 = vmatprep.subr.bf16.mxu1 %v3274_v32  ;;  %v3341_v31 = vld [vmem:[#allocation8 + $0x5c0] ss:$16 sps:$4 sm:$0xff]   ;;  %v3344_v32 = vld [vmem:[#allocation8 + $0x5c8] ss:$16 sps:$4 sm:$0xff]  }
 0x18c   :  { %2061 = vmatpush1.bf16.msra.mxu0 %v3269_v33  ;;  %2225 = vmatpush1.bf16.msra.mxu1 %v3272_v34  ;;  %v3349_v33 = vld [vmem:[#allocation8 + $0x5e4] ss:$16 sps:$4 sm:$0xff]   ;;  %v3352_v34 = vld [vmem:[#allocation8 + $0x5ec] ss:$16 sps:$4 sm:$0xff]  }
 0x18d   :  { %2062 = vmatprep.subr.bf16.mxu0 %v3277_v35  ;;  %2226 = vmatprep.subr.bf16.mxu1 %v3280_v36  ;;  %v396_v35 = vadd.f32 %v3762_v28, %v143_v29  ;;  %v404_v36 = vmax.f32 %v353_v30, 0.0  ;;  %v3421_v29 = vld [vmem:[#allocation8 + $0x764] ss:$16 sps:$4 sm:$0xff]   ;;  %v3424_v30 = vld [vmem:[#allocation8 + $0x76c] ss:$16 sps:$4 sm:$0xff]  }
 0x18f   :  { %v407_v3 = vmax.f32 %v396_v35, 0.0  ;;  %v3425_v35 = vld [vmem:[#allocation8 + $0x780] ss:$16 sps:$4 sm:$0xff]  }
 0x190   :  { %2063 = vmatpush1.bf16.msra.mxu0 %v3275_v37  ;;  %2227 = vmatpush1.bf16.msra.mxu1 %v3278_v43  ;;  %v3347_v37 = vld [vmem:[#allocation8 + $0x5e0] ss:$16 sps:$4 sm:$0xff]   ;;  %v3350_v43 = vld [vmem:[#allocation8 + $0x5e8] ss:$16 sps:$4 sm:$0xff]  }
 0x191   :  { %2064 = vmatprep.subr.bf16.mxu0 %v3283_v44  ;;  %2228 = vmatprep.subr.bf16.mxu1 %v3286_v45  ;;  %v3355_v44 = vld [vmem:[#allocation8 + $0x604] ss:$16 sps:$4 sm:$0xff]   ;;  %v3358_v45 = vld [vmem:[#allocation8 + $0x60c] ss:$16 sps:$4 sm:$0xff]   ;;  %v415_v28 = vpack.c.bf16 %v407_v3, %v407_v3  ;;  %v3434_v3 = vld [vmem:[#allocation8 + $0x7a8] ss:$16 sps:$4 sm:$0xff]  }
 0x194   :  { %2065 = vmatpush1.bf16.msra.mxu0 %v3281_v46  ;;  %2229 = vmatpush1.bf16.msra.mxu1 %v3284_v47  ;;  %v412_v46 = vpack.c.bf16 %v404_v36, %v404_v36  ;;  %v3353_v47 = vld [vmem:[#allocation8 + $0x600] ss:$16 sps:$4 sm:$0xff]   ;;  %v3428_v36 = vld [vmem:[#allocation8 + $0x788] ss:$16 sps:$4 sm:$0xff]  }
 0x195   :  { %2066 = vmatprep.subr.bf16.mxu0 %v3289_v48  ;;  %2230 = vmatprep.subr.bf16.mxu1 %v3292_v49  ;;  %v3356_v48 = vld [vmem:[#allocation8 + $0x608] ss:$16 sps:$4 sm:$0xff]   ;;  %v3361_v49 = vld [vmem:[#allocation8 + $0x624] ss:$16 sps:$4 sm:$0xff]  }
 0x198   :  { %2067 = vmatpush1.bf16.msra.mxu0 %v3287_v50  ;;  %2231 = vmatpush1.bf16.msra.mxu1 %v3290_v52  ;;  %v3364_v50 = vld [vmem:[#allocation8 + $0x62c] ss:$16 sps:$4 sm:$0xff]   ;;  %v3359_v52 = vld [vmem:[#allocation8 + $0x620] ss:$16 sps:$4 sm:$0xff]  }
 0x199   :  { %2068 = vmatprep.subr.bf16.mxu0 %v3295_v53  ;;  %2232 = vmatprep.subr.bf16.mxu1 %v3298_v54  ;;  %v3362_v53 = vld [vmem:[#allocation8 + $0x628] ss:$16 sps:$4 sm:$0xff]   ;;  %v3367_v54 = vld [vmem:[#allocation8 + $0x644] ss:$16 sps:$4 sm:$0xff]  }
 0x19c   :  { %2069 = vmatpush1.bf16.msra.mxu0 %v3293_v55  ;;  %2233 = vmatpush1.bf16.msra.mxu1 %v3296_v56  ;;  %v3370_v55 = vld [vmem:[#allocation8 + $0x64c] ss:$16 sps:$4 sm:$0xff]   ;;  %v3365_v56 = vld [vmem:[#allocation8 + $0x640] ss:$16 sps:$4 sm:$0xff]  }
 0x19d   :  { %2070 = vmatprep.subr.bf16.mxu0 %v3301_v57  ;;  %2234 = vmatprep.subr.bf16.mxu1 %v3304_v58  ;;  %v3368_v57 = vld [vmem:[#allocation8 + $0x648] ss:$16 sps:$4 sm:$0xff]   ;;  %v3373_v58 = vld [vmem:[#allocation8 + $0x664] ss:$16 sps:$4 sm:$0xff]  }
 0x1a0   :  { %2071 = vmatpush1.bf16.msra.mxu0 %v3299_v59  ;;  %2235 = vmatpush1.bf16.msra.mxu1 %v3302_v60  ;;  %v3376_v59 = vld [vmem:[#allocation8 + $0x66c] ss:$16 sps:$4 sm:$0xff]   ;;  %v3371_v60 = vld [vmem:[#allocation8 + $0x660] ss:$16 sps:$4 sm:$0xff]  }
 0x1a1   :  { %2072 = vmatprep.subr.bf16.mxu0 %v3307_v62  ;;  %2236 = vmatprep.subr.bf16.mxu1 %v3310_v63  ;;  %v3374_v62 = vld [vmem:[#allocation8 + $0x668] ss:$16 sps:$4 sm:$0xff]   ;;  %v3379_v63 = vld [vmem:[#allocation8 + $0x684] ss:$16 sps:$4 sm:$0xff]  }
 0x1a4   :  { %2073 = vmatpush1.bf16.msra.mxu0 %v3305_v0  ;;  %2237 = vmatpush1.bf16.msra.mxu1 %v3308_v1  ;;  %v3382_v0 = vld [vmem:[#allocation8 + $0x68c] ss:$16 sps:$4 sm:$0xff]   ;;  %v3377_v1 = vld [vmem:[#allocation8 + $0x680] ss:$16 sps:$4 sm:$0xff]  }
 0x1a5   :  { %2074 = vmatprep.subr.bf16.mxu0 %v3313_v2  ;;  %2238 = vmatprep.subr.bf16.mxu1 %v3316_v5  ;;  %v3380_v2 = vld [vmem:[#allocation8 + $0x688] ss:$16 sps:$4 sm:$0xff]   ;;  %v3385_v5 = vld [vmem:[#allocation8 + $0x6a4] ss:$16 sps:$4 sm:$0xff]  }
 0x1a8   :  { %2075 = vmatpush1.bf16.msra.mxu0 %v3311_v6  ;;  %2239 = vmatpush1.bf16.msra.mxu1 %v3314_v7  ;;  %v3388_v6 = vld [vmem:[#allocation8 + $0x6ac] ss:$16 sps:$4 sm:$0xff]   ;;  %v3383_v7 = vld [vmem:[#allocation8 + $0x6a0] ss:$16 sps:$4 sm:$0xff]  }
 0x1a9   :  { %2076 = vmatprep.subr.bf16.mxu0 %v3319_v8  ;;  %2240 = vmatprep.subr.bf16.mxu1 %v3322_v9  ;;  %v3386_v8 = vld [vmem:[#allocation8 + $0x6a8] ss:$16 sps:$4 sm:$0xff]   ;;  %v3391_v9 = vld [vmem:[#allocation8 + $0x6c4] ss:$16 sps:$4 sm:$0xff]  }
 0x1ac   :  { %2077 = vmatpush1.bf16.msra.mxu0 %v3317_v10  ;;  %2241 = vmatpush1.bf16.msra.mxu1 %v3320_v11  ;;  %v3394_v10 = vld [vmem:[#allocation8 + $0x6cc] ss:$16 sps:$4 sm:$0xff]   ;;  %v3389_v11 = vld [vmem:[#allocation8 + $0x6c0] ss:$16 sps:$4 sm:$0xff]  }
 0x1ad   :  { %2078 = vmatprep.subr.bf16.mxu0 %v3325_v12  ;;  %2242 = vmatprep.subr.bf16.mxu1 %v3328_v13  ;;  %v3392_v12 = vld [vmem:[#allocation8 + $0x6c8] ss:$16 sps:$4 sm:$0xff]   ;;  %v3397_v13 = vld [vmem:[#allocation8 + $0x6e4] ss:$16 sps:$4 sm:$0xff]  }
 0x1b0   :  { %2079 = vmatpush1.bf16.msra.mxu0 %v3323_v14  ;;  %2243 = vmatpush1.bf16.msra.mxu1 %v3326_v15  ;;  %v3400_v14 = vld [vmem:[#allocation8 + $0x6ec] ss:$16 sps:$4 sm:$0xff]   ;;  %v3395_v15 = vld [vmem:[#allocation8 + $0x6e0] ss:$16 sps:$4 sm:$0xff]  }
 0x1b1   :  { %2080 = vmatprep.subr.bf16.mxu0 %v3331_v16  ;;  %2244 = vmatprep.subr.bf16.mxu1 %v3334_v17  ;;  %v3398_v16 = vld [vmem:[#allocation8 + $0x6e8] ss:$16 sps:$4 sm:$0xff]   ;;  %v3403_v17 = vld [vmem:[#allocation8 + $0x704] ss:$16 sps:$4 sm:$0xff]  }
 0x1b4   :  { %2081 = vmatpush1.bf16.msra.mxu0 %v3329_v19  ;;  %2245 = vmatpush1.bf16.msra.mxu1 %v3332_v20  ;;  %v3401_v19 = vld [vmem:[#allocation8 + $0x700] ss:$16 sps:$4 sm:$0xff]   ;;  %v3404_v20 = vld [vmem:[#allocation8 + $0x708] ss:$16 sps:$4 sm:$0xff]  }
 0x1b5   :  { %2082 = vmatprep.subr.bf16.mxu0 %v3337_v21  ;;  %2246 = vmatprep.subr.bf16.mxu1 %v3340_v51  ;;  %v3409_v21 = vld [vmem:[#allocation8 + $0x724] ss:$16 sps:$4 sm:$0xff]   ;;  %v3412_v51 = vld [vmem:[#allocation8 + $0x72c] ss:$16 sps:$4 sm:$0xff]  }
 0x1b8   :  { %2083 = vmatpush1.bf16.msra.mxu0 %v3335_v24  ;;  %2247 = vmatpush1.bf16.msra.mxu1 %v3338_v26  ;;  %v3415_v24 = vld [vmem:[#allocation8 + $0x744] ss:$16 sps:$4 sm:$0xff]   ;;  %v3418_v26 = vld [vmem:[#allocation8 + $0x74c] ss:$16 sps:$4 sm:$0xff]  }
 0x1b9   :  { %2084 = vmatprep.subr.bf16.mxu0 %v3343_v27  ;;  %2248 = vmatprep.subr.bf16.mxu1 %v3346_v4  ;;  %v3413_v27 = vld [vmem:[#allocation8 + $0x740] ss:$16 sps:$4 sm:$0xff]   ;;  %v3416_v4 = vld [vmem:[#allocation8 + $0x748] ss:$16 sps:$4 sm:$0xff]  }
 0x1bc   :  { %2085 = vmatpush1.bf16.msra.mxu0 %v3341_v31  ;;  %2249 = vmatpush1.bf16.msra.mxu1 %v3344_v32  ;;  %v3419_v31 = vld [vmem:[#allocation8 + $0x760] ss:$16 sps:$4 sm:$0xff]   ;;  %v3422_v32 = vld [vmem:[#allocation8 + $0x768] ss:$16 sps:$4 sm:$0xff]  }
 0x1bd   :  { %2086 = vmatprep.subr.bf16.mxu0 %v3349_v33  ;;  %2250 = vmatprep.subr.bf16.mxu1 %v3352_v34  ;;  %v3427_v33 = vld [vmem:[#allocation8 + $0x784] ss:$16 sps:$4 sm:$0xff]   ;;  %v3430_v34 = vld [vmem:[#allocation8 + $0x78c] ss:$16 sps:$4 sm:$0xff]  }
 0x1c0   :  { %2087 = vmatpush1.bf16.msra.mxu0 %v3347_v37  ;;  %2251 = vmatpush1.bf16.msra.mxu1 %v3350_v43  ;;  %v138_v37 = vsub.s32 6, %v3738_v38  ;;  %v3433_v43 = vld [vmem:[#allocation8 + $0x7a4] ss:$16 sps:$4 sm:$0xff]  }
 0x1c1   :  { %2097 = vmatprep.subr.bf16.mxu0 %v3355_v44  ;;  %2261 = vmatprep.subr.bf16.mxu1 %v3358_v45  ;;  %v3436_v44 = vld [vmem:[#allocation8 + $0x7ac] ss:$16 sps:$4 sm:$0xff]   ;;  %v3431_v45 = vld [vmem:[#allocation8 + $0x7a0] ss:$16 sps:$4 sm:$0xff]  }
 0x1c3   :  { %2089 = vmatmul.mubr.bf16.vlgmr.msra.gmra.mrb[8].mxu0 %v412_v46  ;;  %2253 = vmatmul.mubr.bf16.vlgmr.msra.gmra.mrb[8].mxu1 %v412_v46  ;;  %v139_v46 = vrot.slane %v3741_v40, %v138_v37  ;;  %v3449_v40 = vld [vmem:[#allocation10 + $0x40] sm:$0xff]  }
 0x1c4   :  { %2098 = vmatpush1.bf16.msra.mxu0 %v3353_v47  ;;  %2262 = vmatpush1.bf16.msra.mxu1 %v3356_v48  ;;  %v3439_v47 = vld [vmem:[#allocation8 + $0x7c4] ss:$16 sps:$4 sm:$0xff]   ;;  %v3442_v48 = vld [vmem:[#allocation8 + $0x7cc] ss:$16 sps:$4 sm:$0xff]  }
 0x1c5   :  { %2099 = vmatprep.subr.bf16.mxu0 %v3361_v49  ;;  %2263 = vmatprep.subr.bf16.mxu1 %v3364_v50  ;;  %v3437_v49 = vld [vmem:[#allocation8 + $0x7c0] ss:$16 sps:$4 sm:$0xff]   ;;  %v3440_v50 = vld [vmem:[#allocation8 + $0x7c8] ss:$16 sps:$4 sm:$0xff]  }
 0x1c6   :  { %2129 = vmatprep.mubr.bf16.mxu0 %v415_v28  ;;  %2293 = vmatprep.mubr.bf16.mxu1 %v415_v28  ;;  %v394_v28 = vadd.f32 %v3760_v25, %v139_v46  ;;  %v3453_v25 = vld [vmem:[#allocation10 + $0x48] sm:$0xff]  }
 0x1c8   :  { %2100 = vmatpush1.bf16.msra.mxu0 %v3359_v52  ;;  %2264 = vmatpush1.bf16.msra.mxu1 %v3362_v53  ;;  %v3445_v52 = vld [vmem:[#allocation8 + $0x7e4] ss:$16 sps:$4 sm:$0xff]   ;;  %v3448_v53 = vld [vmem:[#allocation8 + $0x7ec] ss:$16 sps:$4 sm:$0xff]  }
 0x1c9   :  { %2101 = vmatprep.subr.bf16.mxu0 %v3367_v54  ;;  %2265 = vmatprep.subr.bf16.mxu1 %v3370_v55  ;;  %v3443_v54 = vld [vmem:[#allocation8 + $0x7e0] ss:$16 sps:$4 sm:$0xff]   ;;  %v3446_v55 = vld [vmem:[#allocation8 + $0x7e8] ss:$16 sps:$4 sm:$0xff]  }
 0x1cc   :  { %2102 = vmatpush1.bf16.msra.mxu0 %v3365_v56  ;;  %2266 = vmatpush1.bf16.msra.mxu1 %v3368_v57  ;;  %v406_v56 = vmax.f32 %v394_v28, 0.0  ;;  %v3450_v57 = vld [vmem:[#allocation10 + $0xc0] sm:$0xff]  }
 0x1cd   :  { %2103 = vmatprep.subr.bf16.mxu0 %v3373_v58  ;;  %2267 = vmatprep.subr.bf16.mxu1 %v3376_v59  ;;  %v3451_v58 = vld [vmem:[#allocation10] sm:$0xff]  }
 0x1ce   :  { %v3452_v59 = vld [vmem:[#allocation10 + $0x80] sm:$0xff]  }
 0x1d0   :  { %2104 = vmatpush1.bf16.msra.mxu0 %v3371_v60  ;;  %2268 = vmatpush1.bf16.msra.mxu1 %v3374_v62  ;;  %v414_v60 = vpack.c.bf16 %v406_v56, %v406_v56  ;;  %v3454_v62 = vld [vmem:[#allocation10 + $0xc8] sm:$0xff]  }
 0x1d1   :  { %2105 = vmatprep.subr.bf16.mxu0 %v3379_v63  ;;  %2269 = vmatprep.subr.bf16.mxu1 %v3382_v0  ;;  %v3455_v63 = vld [vmem:[#allocation10 + $0x8] sm:$0xff]  }
 0x1d2   :  { %v3456_v0 = vld [vmem:[#allocation10 + $0x88] sm:$0xff]  }
 0x1d4   :  { %2106 = vmatpush1.bf16.msra.mxu0 %v3377_v1  ;;  %2270 = vmatpush1.bf16.msra.mxu1 %v3380_v2  ;;  %v3457_v1 = vld [vmem:[#allocation10 + $0x50] sm:$0xff]  }
 0x1d5   :  { %2107 = vmatprep.subr.bf16.mxu0 %v3385_v5  ;;  %2271 = vmatprep.subr.bf16.mxu1 %v3388_v6  ;;  %v3458_v2 = vld [vmem:[#allocation10 + $0xd0] sm:$0xff]  }
 0x1d6   :  { %v3459_v5 = vld [vmem:[#allocation10 + $0x10] sm:$0xff]  }
 0x1d7   :  { %v3460_v6 = vld [vmem:[#allocation10 + $0x90] sm:$0xff]  }
 0x1d8   :  { %2108 = vmatpush1.bf16.msra.mxu0 %v3383_v7  ;;  %2272 = vmatpush1.bf16.msra.mxu1 %v3386_v8  ;;  %v3461_v7 = vld [vmem:[#allocation10 + $0x58] sm:$0xff]  }
 0x1d9   :  { %2109 = vmatprep.subr.bf16.mxu0 %v3391_v9  ;;  %2273 = vmatprep.subr.bf16.mxu1 %v3394_v10  ;;  %v3462_v8 = vld [vmem:[#allocation10 + $0xd8] sm:$0xff]  }
 0x1da   :  { %v3463_v9 = vld [vmem:[#allocation10 + $0x18] sm:$0xff]  }
 0x1db   :  { %v3464_v10 = vld [vmem:[#allocation10 + $0x98] sm:$0xff]  }
 0x1dc   :  { %2110 = vmatpush1.bf16.msra.mxu0 %v3389_v11  ;;  %2274 = vmatpush1.bf16.msra.mxu1 %v3392_v12  ;;  %v3465_v11 = vld [vmem:[#allocation10 + $0x60] sm:$0xff]  }
 0x1dd   :  { %2111 = vmatprep.subr.bf16.mxu0 %v3397_v13  ;;  %2275 = vmatprep.subr.bf16.mxu1 %v3400_v14  ;;  %v3466_v12 = vld [vmem:[#allocation10 + $0xe0] sm:$0xff]  }
 0x1de   :  { %v3467_v13 = vld [vmem:[#allocation10 + $0x20] sm:$0xff]  }
 0x1df   :  { %v3468_v14 = vld [vmem:[#allocation10 + $0xa0] sm:$0xff]  }
 0x1e0   :  { %2112 = vmatpush1.bf16.msra.mxu0 %v3395_v15  ;;  %2276 = vmatpush1.bf16.msra.mxu1 %v3398_v16  ;;  %v3469_v15 = vld [vmem:[#allocation10 + $0x68] sm:$0xff]  }
 0x1e1   :  { %2113 = vmatprep.subr.bf16.mxu0 %v3403_v17  ;;  %2277 = vmatprep.subr.bf16.mxu1 %v3406_v18  ;;  %v3470_v16 = vld [vmem:[#allocation10 + $0xe8] sm:$0xff]  }
 0x1e2   :  { %v3471_v17 = vld [vmem:[#allocation10 + $0x28] sm:$0xff]  }
 0x1e3   :  { %v3472_v18 = vld [vmem:[#allocation10 + $0xa8] sm:$0xff]  }
 0x1e4   :  { %2114 = vmatpush1.bf16.msra.mxu0 %v3401_v19  ;;  %2278 = vmatpush1.bf16.msra.mxu1 %v3404_v20  ;;  %v3473_v19 = vld [vmem:[#allocation10 + $0x70] sm:$0xff]  }
 0x1e5   :  { %2115 = vmatprep.subr.bf16.mxu0 %v3409_v21  ;;  %2279 = vmatprep.subr.bf16.mxu1 %v3412_v51  ;;  %v3474_v20 = vld [vmem:[#allocation10 + $0xf0] sm:$0xff]  }
 0x1e6   :  { %v3475_v21 = vld [vmem:[#allocation10 + $0x30] sm:$0xff]  }
 0x1e7   :  { %v3476_v51 = vld [vmem:[#allocation10 + $0xb0] sm:$0xff]  }
 0x1e8   :  { %2116 = vmatpush1.bf16.msra.mxu0 %v3407_v22  ;;  %2280 = vmatpush1.bf16.msra.mxu1 %v3410_v23  ;;  %v3477_v22 = vld [vmem:[#allocation10 + $0x78] sm:$0xff]  }
 0x1e9   :  { %2117 = vmatprep.subr.bf16.mxu0 %v3415_v24  ;;  %2281 = vmatprep.subr.bf16.mxu1 %v3418_v26  ;;  %v3478_v23 = vld [vmem:[#allocation10 + $0xf8] sm:$0xff]  }
 0x1ea   :  { %v3479_v24 = vld [vmem:[#allocation10 + $0x38] sm:$0xff]  }
 0x1eb   :  { %v3480_v26 = vld [vmem:[#allocation10 + $0xb8] sm:$0xff]  }
 0x1ec   :  { %2118 = vmatpush1.bf16.msra.mxu0 %v3413_v27  ;;  %2282 = vmatpush1.bf16.msra.mxu1 %v3416_v4  ;;  %v672_v27 = vld [vmem:[%s3811_s4] sm:$0xf] }
 0x1ed   :  { %2119 = vmatprep.subr.bf16.mxu0 %v3421_v29  ;;  %2283 = vmatprep.subr.bf16.mxu1 %v3424_v30  ;;  %v677_v4 = vrot.slane %v672_v27, %v114_v39  ;;  %v685_v29 = vrot.slane %v672_v27, %v122_v61  ;;  %v681_v30 = vrot.slane %v672_v27, %v118_v41 }
 0x1f0   :  { %2120 = vmatpush1.bf16.msra.mxu0 %v3419_v31  ;;  %2284 = vmatpush1.bf16.msra.mxu1 %v3422_v32  ;;  %v689_v31 = vrot.slane %v672_v27, %v126_v42 }
 0x1f1   :  { %2121 = vmatprep.subr.bf16.mxu0 %v3427_v33  ;;  %2285 = vmatprep.subr.bf16.mxu1 %v3430_v34 }
 0x1f4   :  { %2122 = vmatpush1.bf16.msra.mxu0 %v3425_v35  ;;  %2286 = vmatpush1.bf16.msra.mxu1 %v3428_v36 }
 0x1f5   :  { %2123 = vmatprep.subr.bf16.mxu0 %v3433_v43  ;;  %2287 = vmatprep.subr.bf16.mxu1 %v3436_v44 }
 0x1f8   :  { %2124 = vmatpush1.bf16.msra.mxu0 %v3431_v45  ;;  %2288 = vmatpush1.bf16.msra.mxu1 %v3434_v3 }
 0x1f9   :  { %2125 = vmatprep.subr.bf16.mxu0 %v3439_v47  ;;  %2289 = vmatprep.subr.bf16.mxu1 %v3442_v48 }
 0x1fc   :  { %2126 = vmatpush1.bf16.msra.mxu0 %v3437_v49  ;;  %2290 = vmatpush1.bf16.msra.mxu1 %v3440_v50 }
 0x1fd   :  { %2127 = vmatprep.subr.bf16.mxu0 %v3445_v52  ;;  %2291 = vmatprep.subr.bf16.mxu1 %v3448_v53  ;;  %v2947_v53 = vld [vmem:[%s3813_s6] ss:$0 sm:$0xff] }
 0x200   :  { %2128 = vmatpush1.bf16.msra.mxu0 %v3443_v54  ;;  %2292 = vmatpush1.bf16.msra.mxu1 %v3446_v55 }
 0x201   :  { %2980 = vmatprep.subr.bf16.mxu0 %v3449_v40  ;;  %3002 = vmatprep.subr.bf16.mxu1 %v3450_v57 }
 0x203   :  { %2130 = vmatmul.mubr.bf16.vlgmr.msra.gmra.mrb[8].mxu0 %v414_v60  ;;  %2294 = vmatmul.mubr.bf16.vlgmr.msra.gmra.mrb[8].mxu1 %v414_v60 }
 0x204   :  { %2981 = vmatpush3.bf16.msra.mxu0 %v3451_v58  ;;  %3003 = vmatpush3.bf16.msra.mxu1 %v3452_v59 }
 0x205   :  { %2982 = vmatprep.subr.bf16.mxu0 %v3453_v25  ;;  %3004 = vmatprep.subr.bf16.mxu1 %v3454_v62 }
 0x208   :  { %2983 = vmatpush3.bf16.msra.mxu0 %v3455_v63  ;;  %3005 = vmatpush3.bf16.msra.mxu1 %v3456_v0 }
 0x209   :  { %2984 = vmatprep.subr.bf16.mxu0 %v3457_v1  ;;  %3006 = vmatprep.subr.bf16.mxu1 %v3458_v2 }
 0x20c   :  { %2985 = vmatpush3.bf16.msra.mxu0 %v3459_v5  ;;  %3007 = vmatpush3.bf16.msra.mxu1 %v3460_v6 }
 0x20d   :  { %2986 = vmatprep.subr.bf16.mxu0 %v3461_v7  ;;  %3008 = vmatprep.subr.bf16.mxu1 %v3462_v8 }
 0x210   :  { %2987 = vmatpush3.bf16.msra.mxu0 %v3463_v9  ;;  %3009 = vmatpush3.bf16.msra.mxu1 %v3464_v10 }
 0x211   :  { %2988 = vmatprep.subr.bf16.mxu0 %v3465_v11  ;;  %3010 = vmatprep.subr.bf16.mxu1 %v3466_v12 }
 0x214   :  { %2989 = vmatpush3.bf16.msra.mxu0 %v3467_v13  ;;  %3011 = vmatpush3.bf16.msra.mxu1 %v3468_v14 }
 0x215   :  { %2990 = vmatprep.subr.bf16.mxu0 %v3469_v15  ;;  %3012 = vmatprep.subr.bf16.mxu1 %v3470_v16 }
 0x218   :  { %2991 = vmatpush3.bf16.msra.mxu0 %v3471_v17  ;;  %3013 = vmatpush3.bf16.msra.mxu1 %v3472_v18 }
 0x219   :  { %2992 = vmatprep.subr.bf16.mxu0 %v3473_v19  ;;  %3014 = vmatprep.subr.bf16.mxu1 %v3474_v20 }
 0x21c   :  { %2993 = vmatpush3.bf16.msra.mxu0 %v3475_v21  ;;  %3015 = vmatpush3.bf16.msra.mxu1 %v3476_v51 }
 0x21d   :  { %2994 = vmatprep.subr.bf16.mxu0 %v3477_v22  ;;  %3016 = vmatprep.subr.bf16.mxu1 %v3478_v23 }
 0x220   :  { %2995 = vmatpush3.bf16.msra.mxu0 %v3479_v24  ;;  %3017 = vmatpush3.bf16.msra.mxu1 %v3480_v26 }
 0x2d6   :  { %v2131_v32 = vpop.f32.mrb[8].mxu0  ;;  %v2295_v33 = vpop.f32.mrb[8].mxu1 }
 0x2d7   :  { %v3024_v34 = vadd.f32 %v2131_v32, %v677_v4  ;;  %v3026_v35 = vadd.f32 %v2295_v33, %v685_v29  ;;  %v2133_v36 = vpop.f32.mrb[9].mxu0  ;;  %v2297_v37 = vpop.f32.mrb[9].mxu1 }
 0x2d8   :  { %v3025_v43 = vadd.f32 %v2133_v36, %v681_v30  ;;  %v3027_v44 = vadd.f32 %v2297_v37, %v689_v31  ;;  %v2135_v45 = vpop.f32.mrb[10].mxu0  ;;  %v2299_v3 = vpop.f32.mrb[10].mxu1 }
 0x2d9   :  { %v2302_v39 = vmax.f32 %v3024_v34, 0.0  ;;  %v2304_v46 = vmax.f32 %v3026_v35, 0.0  ;;  %v2136_v47 = vpop.f32.mrb[11].mxu0  ;;  %v2300_v61 = vpop.f32.mrb[11].mxu1 }
 0x2da   :  { %v2303_v48 = vmax.f32 %v3025_v43, 0.0  ;;  %v2305_v49 = vmax.f32 %v3027_v44, 0.0 }
 0x2db   :  { %v2306_v38 = vpack.c.bf16 %v2302_v39, %v2302_v39  ;;  %v2308_v42 = vpack.c.bf16 %v2304_v46, %v2304_v46 }
 0x2dc   :  { %v2307_v41 = vpack.c.bf16 %v2303_v48, %v2303_v48  ;;  %v2309_v50 = vpack.c.bf16 %v2305_v49, %v2305_v49 }
 0x2de   :  { %2605 = vmatprep.mubr.bf16.mxu0 %v2307_v41  ;;  %2645 = vmatprep.mubr.bf16.mxu1 %v2309_v50 }
 0x2df   :  { %2606 = vmatmul.mubr.bf16.vlgmr.msra.gmra.mrb[12].mxu0 %v2306_v38  ;;  %2646 = vmatmul.mubr.bf16.vlgmr.msra.gmra.mrb[12].mxu1 %v2308_v42 }
 0x3b2   :  { %v2996_v28 = vpop.f32.mrb[12].mxu0  ;;  %v3018_v52 = vpop.f32.mrb[12].mxu1 }
 0x3b3   :  { %v2997_v54 = vpop.f32.mrb[13].mxu0  ;;  %v3019_v55 = vpop.f32.mrb[13].mxu1 }
 0x3b4   :  { %v2998_v56 = vadd.f32 %v2997_v54, %v2996_v28  ;;  %v3020_v40 = vadd.f32 %v3019_v55, %v3018_v52  ;;  %v2999_v57 = vpop.f32.mrb[14].mxu0  ;;  %v3021_v58 = vpop.f32.mrb[14].mxu1 }
 0x3b5   :  { %v3000_v59 = vpop.f32.mrb[15].mxu0  ;;  %v3022_v60 = vpop.f32.mrb[15].mxu1 }
 0x3b6   :  { %v2608_v25 = vadd.f32 %v2998_v56, %v2947_v53 }
 0x3b8   :  { %v2648_v62 = vadd.f32 %v3020_v40, %v2608_v25 }
 0x3ba   :  { %2653 = vst [vmem:[#allocation11] sm:$0xff] %v2648_v62 }
 0x3bb   :  { %3602 = shalt.err (!%p3599_p2)
}
 0x3bc   :  { %s3603_s21 = scalar_lea.hbm %s3814_s7, 128 }
 0x3bd   :  { %p3604_p3 = scmp.ne.s32.totalorder %s3814_s7, %s3603_s21  ;;  %p3607_p4 = scmp.lt.u32.totalorder %s3603_s21, %s3814_s7 }
 0x3bf   :  { %p3609_p5 = pnand %p3607_p4, %p3604_p3 }
 0x3c1   :  { %3612 = shalt.err (!%p3609_p5)
}
 0x3c2   :  { %2663 = dma.vmem_to_hbm [thread:$0]  %s2661_s18, 128, %s3814_s7, [#allocation4]  }
 0x3c3   :  { %3619 = dma.done.wait [#allocation4], 128  }
 0x3c4   :  { %3620 = vsyncadd [#allocation4], 4294967168 }
 0x3c5   :  { %2667 = vsyncpa [#allocation3], 1 }
 0x3c6   :  { %2668 = vsyncpa [#allocation6], 1 }
 0x3c7   :  { %2669 = vsyncpa [#allocation9], 1 }
 0x3c8   :  { %2670 = vsyncpa [#allocation4], 1 }

</bundles_post_ra>
